<compile_context>
chip_gen: v6e
topology: v6e:2x2x1
jax: 0.10.0
libtpu: 0.0.40
codegen_flags: <defaults>
</compile_context>

<pallas_src>
import jax
import jax.numpy as jnp
from jax import lax
from jax.experimental import pallas as pl
from jax.experimental.pallas import tpu as pltpu


# ---------------------------------------------------------------------------
# Kernel 1: dilated 3x3 conv + bias + ReLU   (dilate1 / dilate2 / dilate3)
# ---------------------------------------------------------------------------
def _dilated_conv3x3_relu(x, w_hwio, bias, dilation):
    """x: (B,H,W,C) f32, w_hwio: (3,3,C,Cout), bias: (Cout,). 'same' zero pad."""
    B, H, W, C = x.shape
    Cout = w_hwio.shape[-1]
    pad = dilation
    Hp, Wp = H + 2 * pad, W + 2 * pad
    wf = w_hwio.reshape(9 * C, Cout).astype(jnp.float32)   # rows ordered (ky,kx,c)
    b2 = bias.reshape(1, Cout).astype(jnp.float32)

    def kernel(x_ref, w_ref, b_ref, o_ref, xp_ref, col_ref):
        # In-kernel zero padding: VMEM scratch, never materialized in HBM.
        xp_ref[...] = jnp.zeros((Hp, Wp, C), jnp.float32)
        xp_ref[pad:pad + H, pad:pad + W, :] = x_ref[0].astype(jnp.float32)
        # im2col: ref-sliced tap patches packed into (H, W, 9*C); only one
        # patch is live in vregs at a time.
        for ky in range(3):
            for kx in range(3):
                t = ky * 3 + kx
                col_ref[:, :, t * C:(t + 1) * C] = xp_ref[
                    ky * dilation: ky * dilation + H,
                    kx * dilation: kx * dilation + W, :]
        # Single MXU matmul with K = 9*C (instead of 9 K=C matmuls).
        acc = jnp.einsum("hwc,cf->hwf", col_ref[...], w_ref[...],
                         preferred_element_type=jnp.float32)
        acc = acc + b_ref[0][None, None, :]
        o_ref[0] = jnp.maximum(acc, 0.0).astype(o_ref.dtype)

    return pl.pallas_call(
        kernel,
        out_shape=jax.ShapeDtypeStruct((B, H, W, Cout), x.dtype),
        grid=(B,),
        in_specs=[
            pl.BlockSpec((1, H, W, C), lambda b: (b, 0, 0, 0)),
            pl.BlockSpec((9 * C, Cout), lambda b: (0, 0)),
            pl.BlockSpec((1, Cout), lambda b: (0, 0)),
        ],
        out_specs=pl.BlockSpec((1, H, W, Cout), lambda b: (b, 0, 0, 0)),
        scratch_shapes=[pltpu.VMEM((Hp, Wp, C), jnp.float32),
                        pltpu.VMEM((H, W, 9 * C), jnp.float32)],
        compiler_params=pltpu.CompilerParams(dimension_semantics=("parallel",)),
    )(x, wf, b2)


# ---------------------------------------------------------------------------
# Kernel 2: fuse (x + d1 + d2 + d3) + attention head
#           (channel mean / channel max -> 1x1 conv(2->2) -> ReLU), VPU only.
# ---------------------------------------------------------------------------
def _fuse_and_attention_head(x, d1, d2, d3, w1x1, b1x1):
    B, H, W, C = x.shape
    # 1x1 conv weights/bias as 6 SMEM scalars: [w(i0,o0), w(i0,o1), w(i1,o0), w(i1,o1), b0, b1]
    head = jnp.concatenate([w1x1.reshape(-1), b1x1.reshape(-1)]).astype(jnp.float32)

    def kernel(head_ref, x_ref, d1_ref, d2_ref, d3_ref, out_ref, attn_ref):
        s = (x_ref[0].astype(jnp.float32) + d1_ref[0].astype(jnp.float32)
             + d2_ref[0].astype(jnp.float32) + d3_ref[0].astype(jnp.float32))
        out_ref[0] = s.astype(out_ref.dtype)
        # Reductions in f32 (XLU lane reduce).
        avg = jnp.mean(s, axis=-1, keepdims=True)        # (H, W, 1)
        mx = jnp.max(s, axis=-1, keepdims=True)          # (H, W, 1)
        # 1x1 conv (2 -> 2) + ReLU with SMEM scalar weights: pure VPU work,
        # no K=2 matmuls on the MXU, no extra pallas_call / HBM round trip.
        t0 = jnp.maximum(avg * head_ref[0] + mx * head_ref[2] + head_ref[4], 0.0)
        t1 = jnp.maximum(avg * head_ref[1] + mx * head_ref[3] + head_ref[5], 0.0)
        attn_ref[0, :, :, 0:1] = t0.astype(attn_ref.dtype)
        attn_ref[0, :, :, 1:2] = t1.astype(attn_ref.dtype)

    spec_c = pl.BlockSpec((1, H, W, C), lambda b: (b, 0, 0, 0))
    out, attn = pl.pallas_call(
        kernel,
        out_shape=(jax.ShapeDtypeStruct((B, H, W, C), x.dtype),
                   jax.ShapeDtypeStruct((B, H, W, 2), jnp.float32)),
        grid=(B,),
        in_specs=[pl.BlockSpec(memory_space=pltpu.MemorySpace.SMEM),
                  spec_c, spec_c, spec_c, spec_c],
        out_specs=(spec_c, pl.BlockSpec((1, H, W, 2), lambda b: (b, 0, 0, 0))),
        compiler_params=pltpu.CompilerParams(dimension_semantics=("parallel",)),
    )(head, x, d1, d2, d3)
    return out, attn


# ---------------------------------------------------------------------------
# Kernel 3: 7x7 SA conv (on reflect-padded 2-channel map, VPU) + modulation
#           (out * sattn) + DIRECT stride-2 3x3 downsample conv, fused.
# ---------------------------------------------------------------------------
def _sa_modulate_downsample(out, attn_pad, sa_w, sa_b, down_w, down_b):
    B, H, W, C = out.shape
    Cout = down_w.shape[-1]
    Ho = (H - 1) // 2 + 1
    Wo = (W - 1) // 2 + 1
    Hp, Wp = H + 2, W + 2                       # zero 'same' pad for the 3x3 s2 conv
    Hap, Wap = attn_pad.shape[1], attn_pad.shape[2]
    # 7x7x2 SA weights + bias flattened to 99 SMEM scalars, index (ky*7+kx)*2+c.
    saw = jnp.concatenate([sa_w.reshape(-1), sa_b.reshape(-1)]).astype(jnp.float32)
    wd = down_w.reshape(9 * C, Cout).astype(jnp.float32)
    bd = down_b.reshape(1, Cout).astype(jnp.float32)

    def kernel(saw_ref, out_ref, ap_ref, wd_ref, bd_ref, o_ref, mp_ref, col_ref):
        # ---- 7x7 spatial-attention conv (2 -> 1), pure VPU (no sigmoid in
        #      the PyTorch module, so none here) ----
        sattn = jnp.full((H, W, 1), saw_ref[98], jnp.float32)
        for ky in range(7):
            for kx in range(7):
                a = ap_ref[0, ky:ky + H, kx:kx + W, :]            # (H, W, 2)
                t = 2 * (ky * 7 + kx)
                sattn = sattn + (a[:, :, 0:1] * saw_ref[t]
                                 + a[:, :, 1:2] * saw_ref[t + 1])
        # ---- fused modulation: `mod` never hits HBM ----
        mod = out_ref[0].astype(jnp.float32) * sattn              # (H, W, C)
        # in-kernel zero 'same' padding into VMEM scratch
        mp_ref[...] = jnp.zeros((Hp, Wp, C), jnp.float32)
        mp_ref[1:1 + H, 1:1 + W, :] = mod
        # ---- direct stride-2 3x3 conv: strided tap gather + one MXU matmul ----
        for ky in range(3):
            for kx in range(3):
                t = ky * 3 + kx
                col_ref[:, :, t * C:(t + 1) * C] = mp_ref[
                    pl.ds(ky, Ho, stride=2), pl.ds(kx, Wo, stride=2), :]
        acc = jnp.einsum("hwc,cf->hwf", col_ref[...], wd_ref[...],
                         preferred_element_type=jnp.float32)
        acc = acc + bd_ref[0][None, None, :]
        o_ref[0] = acc.astype(o_ref.dtype)

    return pl.pallas_call(
        kernel,
        out_shape=jax.ShapeDtypeStruct((B, Ho, Wo, Cout), out.dtype),
        grid=(B,),
        in_specs=[
            pl.BlockSpec(memory_space=pltpu.MemorySpace.SMEM),
            pl.BlockSpec((1, H, W, C), lambda b: (b, 0, 0, 0)),
            pl.BlockSpec((1, Hap, Wap, 2), lambda b: (b, 0, 0, 0)),
            pl.BlockSpec((9 * C, Cout), lambda b: (0, 0)),
            pl.BlockSpec((1, Cout), lambda b: (0, 0)),
        ],
        out_specs=pl.BlockSpec((1, Ho, Wo, Cout), lambda b: (b, 0, 0, 0)),
        scratch_shapes=[pltpu.VMEM((Hp, Wp, C), jnp.float32),
                        pltpu.VMEM((Ho, Wo, 9 * C), jnp.float32)],
        compiler_params=pltpu.CompilerParams(dimension_semantics=("parallel",)),
    )(saw, out, attn_pad, wd, bd)


# ---------------------------------------------------------------------------
# Parameters (biases zeroed exactly as HDCblock.__init__ does)
# ---------------------------------------------------------------------------
def init_params(key, in_channels, out_channels):
    ks = jax.random.split(key, 6)

    def w(k, kh, kw, cin, cout, scale=0.05):
        return scale * jax.random.normal(k, (kh, kw, cin, cout), jnp.float32)

    zeros = lambda c: jnp.zeros((c,), jnp.float32)
    return {
        "dilate1_w": w(ks[0], 3, 3, in_channels, in_channels), "dilate1_b": zeros(in_channels),
        "dilate2_w": w(ks[1], 3, 3, in_channels, in_channels), "dilate2_b": zeros(in_channels),
        "dilate3_w": w(ks[2], 3, 3, in_channels, in_channels), "dilate3_b": zeros(in_channels),
        "conv1x1_w": w(ks[3], 1, 1, 2, 2),                     "conv1x1_b": zeros(2),
        "sa_w":      w(ks[4], 7, 7, 2, 1),                     "sa_b":      zeros(1),
        "down_w":    w(ks[5], 3, 3, in_channels, out_channels), "down_b":   zeros(out_channels),
    }


# ---------------------------------------------------------------------------
# HDCblock forward (Pallas)
# ---------------------------------------------------------------------------
def hdc_block_forward(x_nchw, p):
    x = jnp.transpose(x_nchw, (0, 2, 3, 1))  # NCHW -> NHWC

    d1 = _dilated_conv3x3_relu(x,  p["dilate1_w"], p["dilate1_b"], dilation=1)
    d2 = _dilated_conv3x3_relu(d1, p["dilate2_w"], p["dilate2_b"], dilation=2)
    d3 = _dilated_conv3x3_relu(d2, p["dilate3_w"], p["dilate3_b"], dilation=4)

    out, attn = _fuse_and_attention_head(x, d1, d2, d3,
                                         p["conv1x1_w"], p["conv1x1_b"])

    # Tiny reflect pad of the 2-channel attention map (glue; negligible HBM).
    attn_p = jnp.pad(attn, ((0, 0), (3, 3), (3, 3), (0, 0)), mode="reflect")

    down = _sa_modulate_downsample(out, attn_p, p["sa_w"], p["sa_b"],
                                   p["down_w"], p["down_b"])
    return jnp.transpose(down, (0, 3, 1, 2))  # NHWC -> NCHW


# ---------------------------------------------------------------------------
# Pure-JAX reference (same math) for verification
# ---------------------------------------------------------------------------
def _conv_ref(x, w, b, dilation, pad, pad_mode, relu, stride=1):
    if pad > 0:
        mode = "reflect" if pad_mode == "reflect" else "constant"
        x = jnp.pad(x, ((0, 0), (pad, pad), (pad, pad), (0, 0)), mode=mode)
    y = lax.conv_general_dilated(
        x, w, window_strides=(stride, stride), padding="VALID",
        rhs_dilation=(dilation, dilation),
        dimension_numbers=("NHWC", "HWIO", "NHWC"))
    y = y + b[None, None, None, :]
    return jnp.maximum(y, 0.0) if relu else y


def hdc_block_ref(x_nchw, p):
    x = jnp.transpose(x_nchw, (0, 2, 3, 1))
    d1 = _conv_ref(x,  p["dilate1_w"], p["dilate1_b"], 1, 1, "zero", True)
    d2 = _conv_ref(d1, p["dilate2_w"], p["dilate2_b"], 2, 2, "zero", True)
    d3 = _conv_ref(d2, p["dilate3_w"], p["dilate3_b"], 4, 4, "zero", True)
    out = x + d1 + d2 + d3
    attn = jnp.concatenate([jnp.mean(out, -1, keepdims=True),
                            jnp.max(out, -1, keepdims=True)], axis=-1)
    a = _conv_ref(attn, p["conv1x1_w"], p["conv1x1_b"], 1, 0, "zero", True)
    sattn = _conv_ref(a, p["sa_w"], p["sa_b"], 1, 3, "reflect", False)
    mod = out * sattn
    down = _conv_ref(mod, p["down_w"], p["down_b"], 1, 1, "zero", False, stride=2)
    return jnp.transpose(down, (0, 3, 1, 2))


# ---------------------------------------------------------------------------
if __name__ == "__main__":
    key = jax.random.PRNGKey(0)
    k_x, k_p = jax.random.split(key)

    B, C_IN, C_OUT, H, W = 2, 8, 16, 16, 16
    x = jax.random.normal(k_x, (B, C_IN, H, W), jnp.float32)   # NCHW, as PyTorch
    params = init_params(k_p, C_IN, C_OUT)

    y = hdc_block_forward(x, params)
    y = jax.block_until_ready(y)

    y_ref = hdc_block_ref(x, params)
    assert y.shape == (B, C_OUT, H // 2, W // 2), y.shape
    assert jnp.allclose(y, y_ref, atol=1e-4, rtol=1e-4), \
        float(jnp.max(jnp.abs(y - y_ref)))

    print("KERNEL_OK")
</pallas_src>

<mosaic_0001>
module attributes {stable_mosaic.version = 11 : i64} {
  func.func @kernel(%arg0: i32, %arg1: memref<1x16x16x8xf32, #tpu.memory_space<vmem>>, %arg2: memref<72x8xf32, #tpu.memory_space<vmem>>, %arg3: memref<1x8xf32, #tpu.memory_space<vmem>>, %arg4: memref<1x16x16x8xf32, #tpu.memory_space<vmem>>, %arg5: memref<18x18x8xf32, #tpu.memory_space<vmem>>, %arg6: memref<16x16x72xf32, #tpu.memory_space<vmem>>) attributes {dimension_semantics = [#tpu.dimension_semantics<parallel>], iteration_bounds = array<i64: 2>, scalar_prefetch = 0 : i64, scratch_operands = 2 : i64, tpu.core_type = #tpu.core_type<tc>, window_params = [{transform_indices = @transform_0, window_bounds = array<i64: 1, 16, 16, 8>}, {pipeline_mode = #tpu.pipeline_mode<synchronous>, transform_indices = @transform_1, window_bounds = array<i64: 72, 8>}, {pipeline_mode = #tpu.pipeline_mode<synchronous>, transform_indices = @transform_2, window_bounds = array<i64: 1, 8>}, {transform_indices = @transform_3, window_bounds = array<i64: 1, 16, 16, 8>}]} {
    %cst = arith.constant 0.000000e+00 : f32
    %0 = vector.broadcast %cst : f32 to vector<18x18x8xf32>
    %c0 = arith.constant 0 : index
    %c0_0 = arith.constant 0 : index
    %c0_1 = arith.constant 0 : index
    %1 = vector.load %arg5[%c0, %c0_0, %c0_1] : memref<18x18x8xf32, #tpu.memory_space<vmem>>, vector<18x18x8xf32>
    tpu.vector_store %arg5[%c0, %c0_0, %c0_1], %0 {strides = array<i32>} : memref<18x18x8xf32, #tpu.memory_space<vmem>>, vector<18x18x8xf32>,
    %c0_2 = arith.constant 0 : index
    %c0_3 = arith.constant 0 : index
    %c0_4 = arith.constant 0 : index
    %c0_5 = arith.constant 0 : index
    %2 = vector.load %arg1[%c0_2, %c0_3, %c0_4, %c0_5] : memref<1x16x16x8xf32, #tpu.memory_space<vmem>>, vector<1x16x16x8xf32>
    %3 = vector.shape_cast %2 : vector<1x16x16x8xf32> to vector<16x16x8xf32>
    %c1 = arith.constant 1 : index
    %c1_6 = arith.constant 1 : index
    %c0_7 = arith.constant 0 : index
    %4 = vector.load %arg5[%c1, %c1_6, %c0_7] : memref<18x18x8xf32, #tpu.memory_space<vmem>>, vector<16x16x8xf32>
    tpu.vector_store %arg5[%c1, %c1_6, %c0_7], %3 {strides = array<i32>} : memref<18x18x8xf32, #tpu.memory_space<vmem>>, vector<16x16x8xf32>,
    %c0_8 = arith.constant 0 : index
    %c0_9 = arith.constant 0 : index
    %c0_10 = arith.constant 0 : index
    %5 = vector.load %arg5[%c0_8, %c0_9, %c0_10] : memref<18x18x8xf32, #tpu.memory_space<vmem>>, vector<16x16x8xf32>
    %c0_11 = arith.constant 0 : index
    %c0_12 = arith.constant 0 : index
    %c0_13 = arith.constant 0 : index
    %6 = vector.load %arg6[%c0_11, %c0_12, %c0_13] : memref<16x16x72xf32, #tpu.memory_space<vmem>>, vector<16x16x8xf32>
    tpu.vector_store %arg6[%c0_11, %c0_12, %c0_13], %5 {strides = array<i32>} : memref<16x16x72xf32, #tpu.memory_space<vmem>>, vector<16x16x8xf32>,
    %c0_14 = arith.constant 0 : index
    %c1_15 = arith.constant 1 : index
    %c0_16 = arith.constant 0 : index
    %7 = vector.load %arg5[%c0_14, %c1_15, %c0_16] : memref<18x18x8xf32, #tpu.memory_space<vmem>>, vector<16x16x8xf32>
    %c0_17 = arith.constant 0 : index
    %c0_18 = arith.constant 0 : index
    %c8 = arith.constant 8 : index
    %8 = vector.load %arg6[%c0_17, %c0_18, %c8] : memref<16x16x72xf32, #tpu.memory_space<vmem>>, vector<16x16x8xf32>
    tpu.vector_store %arg6[%c0_17, %c0_18, %c8], %7 {strides = array<i32>} : memref<16x16x72xf32, #tpu.memory_space<vmem>>, vector<16x16x8xf32>,
    %c0_19 = arith.constant 0 : index
    %c2 = arith.constant 2 : index
    %c0_20 = arith.constant 0 : index
    %9 = vector.load %arg5[%c0_19, %c2, %c0_20] : memref<18x18x8xf32, #tpu.memory_space<vmem>>, vector<16x16x8xf32>
    %c0_21 = arith.constant 0 : index
    %c0_22 = arith.constant 0 : index
    %c16 = arith.constant 16 : index
    %10 = vector.load %arg6[%c0_21, %c0_22, %c16] : memref<16x16x72xf32, #tpu.memory_space<vmem>>, vector<16x16x8xf32>
    tpu.vector_store %arg6[%c0_21, %c0_22, %c16], %9 {strides = array<i32>} : memref<16x16x72xf32, #tpu.memory_space<vmem>>, vector<16x16x8xf32>,
    %c1_23 = arith.constant 1 : index
    %c0_24 = arith.constant 0 : index
    %c0_25 = arith.constant 0 : index
    %11 = vector.load %arg5[%c1_23, %c0_24, %c0_25] : memref<18x18x8xf32, #tpu.memory_space<vmem>>, vector<16x16x8xf32>
    %c0_26 = arith.constant 0 : index
    %c0_27 = arith.constant 0 : index
    %c24 = arith.constant 24 : index
    %12 = vector.load %arg6[%c0_26, %c0_27, %c24] : memref<16x16x72xf32, #tpu.memory_space<vmem>>, vector<16x16x8xf32>
    tpu.vector_store %arg6[%c0_26, %c0_27, %c24], %11 {strides = array<i32>} : memref<16x16x72xf32, #tpu.memory_space<vmem>>, vector<16x16x8xf32>,
    %c1_28 = arith.constant 1 : index
    %c1_29 = arith.constant 1 : index
    %c0_30 = arith.constant 0 : index
    %13 = vector.load %arg5[%c1_28, %c1_29, %c0_30] : memref<18x18x8xf32, #tpu.memory_space<vmem>>, vector<16x16x8xf32>
    %c0_31 = arith.constant 0 : index
    %c0_32 = arith.constant 0 : index
    %c32 = arith.constant 32 : index
    %14 = vector.load %arg6[%c0_31, %c0_32, %c32] : memref<16x16x72xf32, #tpu.memory_space<vmem>>, vector<16x16x8xf32>
    tpu.vector_store %arg6[%c0_31, %c0_32, %c32], %13 {strides = array<i32>} : memref<16x16x72xf32, #tpu.memory_space<vmem>>, vector<16x16x8xf32>,
    %c1_33 = arith.constant 1 : index
    %c2_34 = arith.constant 2 : index
    %c0_35 = arith.constant 0 : index
    %15 = vector.load %arg5[%c1_33, %c2_34, %c0_35] : memref<18x18x8xf32, #tpu.memory_space<vmem>>, vector<16x16x8xf32>
    %c0_36 = arith.constant 0 : index
    %c0_37 = arith.constant 0 : index
    %c40 = arith.constant 40 : index
    %16 = vector.load %arg6[%c0_36, %c0_37, %c40] : memref<16x16x72xf32, #tpu.memory_space<vmem>>, vector<16x16x8xf32>
    tpu.vector_store %arg6[%c0_36, %c0_37, %c40], %15 {strides = array<i32>} : memref<16x16x72xf32, #tpu.memory_space<vmem>>, vector<16x16x8xf32>,
    %c2_38 = arith.constant 2 : index
    %c0_39 = arith.constant 0 : index
    %c0_40 = arith.constant 0 : index
    %17 = vector.load %arg5[%c2_38, %c0_39, %c0_40] : memref<18x18x8xf32, #tpu.memory_space<vmem>>, vector<16x16x8xf32>
    %c0_41 = arith.constant 0 : index
    %c0_42 = arith.constant 0 : index
    %c48 = arith.constant 48 : index
    %18 = vector.load %arg6[%c0_41, %c0_42, %c48] : memref<16x16x72xf32, #tpu.memory_space<vmem>>, vector<16x16x8xf32>
    tpu.vector_store %arg6[%c0_41, %c0_42, %c48], %17 {strides = array<i32>} : memref<16x16x72xf32, #tpu.memory_space<vmem>>, vector<16x16x8xf32>,
    %c2_43 = arith.constant 2 : index
    %c1_44 = arith.constant 1 : index
    %c0_45 = arith.constant 0 : index
    %19 = vector.load %arg5[%c2_43, %c1_44, %c0_45] : memref<18x18x8xf32, #tpu.memory_space<vmem>>, vector<16x16x8xf32>
    %c0_46 = arith.constant 0 : index
    %c0_47 = arith.constant 0 : index
    %c56 = arith.constant 56 : index
    %20 = vector.load %arg6[%c0_46, %c0_47, %c56] : memref<16x16x72xf32, #tpu.memory_space<vmem>>, vector<16x16x8xf32>
    tpu.vector_store %arg6[%c0_46, %c0_47, %c56], %19 {strides = array<i32>} : memref<16x16x72xf32, #tpu.memory_space<vmem>>, vector<16x16x8xf32>,
    %c2_48 = arith.constant 2 : index
    %c2_49 = arith.constant 2 : index
    %c0_50 = arith.constant 0 : index
    %21 = vector.load %arg5[%c2_48, %c2_49, %c0_50] : memref<18x18x8xf32, #tpu.memory_space<vmem>>, vector<16x16x8xf32>
    %c0_51 = arith.constant 0 : index
    %c0_52 = arith.constant 0 : index
    %c64 = arith.constant 64 : index
    %22 = vector.load %arg6[%c0_51, %c0_52, %c64] : memref<16x16x72xf32, #tpu.memory_space<vmem>>, vector<16x16x8xf32>
    tpu.vector_store %arg6[%c0_51, %c0_52, %c64], %21 {strides = array<i32>} : memref<16x16x72xf32, #tpu.memory_space<vmem>>, vector<16x16x8xf32>,
    %c0_53 = arith.constant 0 : index
    %c0_54 = arith.constant 0 : index
    %c0_55 = arith.constant 0 : index
    %23 = vector.load %arg6[%c0_53, %c0_54, %c0_55] : memref<16x16x72xf32, #tpu.memory_space<vmem>>, vector<16x16x72xf32>
    %c0_56 = arith.constant 0 : index
    %c0_57 = arith.constant 0 : index
    %24 = vector.load %arg2[%c0_56, %c0_57] : memref<72x8xf32, #tpu.memory_space<vmem>>, vector<72x8xf32>
    "tpu.trace_start"() <{level = 10 : i32, message = "hwc,cf->hwf"}> : () -> ()
    %cst_58 = arith.constant dense<0.000000e+00> : vector<16x16x8xf32>
    %25 = tpu.matmul %23, %24, %cst_58 {dimension_numbers = #tpu.dot_dimension_numbers<[2], [0], [0, 1], [1], [0, 0, 0, 1, 1, 1], [], []>} : vector<16x16x72xf32>, vector<72x8xf32>, vector<16x16x8xf32> -> vector<16x16x8xf32>
    "tpu.trace_stop"() : () -> ()
    %c0_59 = arith.constant 0 : index
    %c0_60 = arith.constant 0 : index
    %26 = vector.load %arg3[%c0_59, %c0_60] : memref<1x8xf32, #tpu.memory_space<vmem>>, vector<1x8xf32>
    %27 = vector.shape_cast %26 : vector<1x8xf32> to vector<8xf32>
    %28 = vector.shape_cast %27 : vector<8xf32> to vector<1x1x8xf32>
    %29 = vector.broadcast %28 : vector<1x1x8xf32> to vector<16x16x8xf32>
    %30 = arith.addf %25, %29 : vector<16x16x8xf32>
    %cst_61 = arith.constant 0.000000e+00 : f32
    %31 = vector.broadcast %cst_61 : f32 to vector<16x16x8xf32>
    %32 = arith.maximumf %30, %31 : vector<16x16x8xf32>
    %c0_62 = arith.constant 0 : index
    %c0_63 = arith.constant 0 : index
    %c0_64 = arith.constant 0 : index
    %c0_65 = arith.constant 0 : index
    %33 = vector.load %arg4[%c0_62, %c0_63, %c0_64, %c0_65] : memref<1x16x16x8xf32, #tpu.memory_space<vmem>>, vector<1x16x16x8xf32>
    %34 = vector.shape_cast %33 : vector<1x16x16x8xf32> to vector<16x16x8xf32>
    %35 = vector.shape_cast %32 : vector<16x16x8xf32> to vector<1x16x16x8xf32>
    tpu.vector_store %arg4[%c0_62, %c0_63, %c0_64, %c0_65], %35 {strides = array<i32>} : memref<1x16x16x8xf32, #tpu.memory_space<vmem>>, vector<1x16x16x8xf32>,
    return
  }
  func.func @transform_0(%arg0: i32) -> (i32, i32, i32, i32) {
    %c0_i32 = arith.constant 0 : i32
    %c0_i32_0 = arith.constant 0 : i32
    %c0_i32_1 = arith.constant 0 : i32
    %c0_i32_2 = arith.constant 0 : i32
    return %arg0, %c0_i32, %c0_i32_0, %c0_i32_1 : i32, i32, i32, i32
  }
  func.func @transform_1(%arg0: i32) -> (i32, i32) {
    %c0_i32 = arith.constant 0 : i32
    %c0_i32_0 = arith.constant 0 : i32
    %c0_i32_1 = arith.constant 0 : i32
    return %c0_i32, %c0_i32_0 : i32, i32
  }
  func.func @transform_2(%arg0: i32) -> (i32, i32) {
    %c0_i32 = arith.constant 0 : i32
    %c0_i32_0 = arith.constant 0 : i32
    %c0_i32_1 = arith.constant 0 : i32
    return %c0_i32, %c0_i32_0 : i32, i32
  }
  func.func @transform_3(%arg0: i32) -> (i32, i32, i32, i32) {
    %c0_i32 = arith.constant 0 : i32
    %c0_i32_0 = arith.constant 0 : i32
    %c0_i32_1 = arith.constant 0 : i32
    %c0_i32_2 = arith.constant 0 : i32
    return %arg0, %c0_i32, %c0_i32_0, %c0_i32_1 : i32, i32, i32, i32
  }
}

</mosaic_0001>

<bundles_post_ra>
// kernel: tpu_custom_call.1
= control target key start
LH: loop header
LB: loop body
LE: loop exit
PB: predicated region body
PF: predicated region fallthrough
CT: control target
= control target key end

     0   :  { %s2615_s12 = smov 0   ;;  %s3753_s0 = inlined_call_operand.vmem [shape: f32[2,16,16,8], index: 0, kind: input, shape index: {}]   ;;  %s3754_s1 = inlined_call_operand.vmem [shape: f32[72,8], index: 1, kind: input, shape index: {}]   ;;  %s3755_s2 = inlined_call_operand.vmem [shape: f32[1,8], index: 2, kind: input, shape index: {}]   ;;  %s3756_s3 = inlined_call_operand.vmem [shape: f32[2,16,16,8], index: 3, kind: output, shape index: {}]  }
   0x1 LB: > { %s2390_s13 = sadd.s32 4294967295, %s2584_s12   ;;  %p2394_p0 = scmp.ge.s32.totalorder %s2584_s12, 1  ;;  %s2584_s12 = sphi %s2615_s12, %s13_s12  }
   0x2   : > { %p137_p1 = scmp.lt.s32.totalorder %s2584_s12, 3 }
   0x4   : > { %p138_p2 = pnand %p2394_p0, %p137_p1 }
   0x6   : > { %141 = sbr.rel (%p138_p2) target bundleno = 878 (0x36e), region = 32 }
   0xb   : > { %vm171_vm0 = vcmask 64512   ;;  %p2625_p3 = scmp.lt.s32.totalorder %s2390_s13, 1  ;;  %vm174_vm1 = vcmask 58368   ;;  %v2586_v0 = vmov 0.0   ;;  %s2587_s19 = smov 8   ;;  %vm516_vm2 = vcmask 130112  }
   0xc   : > { %172 = vst.msk [vmem:[#allocation2] sm:$0xff] %vm171_vm0, %v2586_v0  ;;  %173 = vst.msk [vmem:[#allocation2 + $0x8] sm:$0xff] %vm171_vm0, %v2586_v0  ;;  %s2588_s20 = smov 16   ;;  %s2589_s21 = smov 24   ;;  %vm709_vm3 = vcmask 195712   ;;  %vm902_vm4 = vcmask 261312  }
   0xd   : > { %176 = vst.msk [vmem:[#allocation2 + $0x18] sm:$0xff] %vm171_vm0, %v2586_v0  ;;  %177 = vst.msk [vmem:[#allocation2 + $0x20] sm:$0xff] %vm171_vm0, %v2586_v0  ;;  %s3783_s13 = smov (!%p2625_p3, %s2390_s13), 1  ;;  %s2590_s22 = smov 32   ;;  %vm1095_vm5 = vcmask 326912   ;;  %vm1288_vm6 = vcmask 392512  }
   0xe   : > { %179 = vst.msk [vmem:[#allocation2 + $0x30] sm:$0xff] %vm171_vm0, %v2586_v0  ;;  %180 = vst.msk [vmem:[#allocation2 + $0x38] sm:$0xff] %vm171_vm0, %v2586_v0  ;;  %s2434_s15 = sshll.u32 %s3783_s13, 8  ;;  %s2591_s23 = smov 40   ;;  %vm1482_vm7 = vcmask 458112   ;;  %vm1675_vm8 = vcmask 523712  }
   0xf   : > { %182 = vst.msk [vmem:[#allocation2 + $0x48] sm:$0xff] %vm171_vm0, %v2586_v0  ;;  %183 = vst.msk [vmem:[#allocation2 + $0x50] sm:$0xff] %vm171_vm0, %v2586_v0  ;;  %s2695_s18 = scalar_lea.vmem %s3753_s0, %s2434_s15  ;;  %s2592_s24 = smov 48   ;;  %vm1868_vm9 = vcmask 589312   ;;  %vm1949_vm10 = vcmask 588800  }
  0x10   : > { %185 = vst.msk [vmem:[#allocation2 + $0x60] sm:$0xff] %vm171_vm0, %v2586_v0  ;;  %186 = vst.msk [vmem:[#allocation2 + $0x68] sm:$0xff] %vm171_vm0, %v2586_v0  ;;  %v227_v1 = vld [vmem:[%s2695_s18] sm:$0xff]  ;;  %v228_v2 = vld [vmem:[%s2695_s18 + $0x8] sm:$0xff]  ;;  %s2593_s27 = smov 56   ;;  %s2594_s9 = smov 64  }
  0x11   : > { %188 = vst.msk [vmem:[#allocation2 + $0x78] sm:$0xff] %vm171_vm0, %v2586_v0  ;;  %189 = vst.msk [vmem:[#allocation2 + $0x80] sm:$0xff] %vm171_vm0, %v2586_v0  ;;  %v229_v3 = vld [vmem:[%s2695_s18 + $0x10] sm:$0xff]  ;;  %v230_v4 = vld [vmem:[%s2695_s18 + $0x18] sm:$0xff]  ;;  %s3620_s25 = scalar_lea.vmem %s3756_s3, %s2434_s15 }
  0x12   : > { %191 = vst.msk [vmem:[#allocation2 + $0x90] sm:$0xff] %vm171_vm0, %v2586_v0  ;;  %192 = vst.msk [vmem:[#allocation2 + $0x98] sm:$0xff] %vm171_vm0, %v2586_v0  ;;  %v231_v5 = vld [vmem:[%s2695_s18 + $0x20] sm:$0xff]  ;;  %v232_v6 = vld [vmem:[%s2695_s18 + $0x28] sm:$0xff] }
  0x13   : > { %194 = vst.msk [vmem:[#allocation2 + $0xa8] sm:$0xff] %vm171_vm0, %v2586_v0  ;;  %195 = vst.msk [vmem:[#allocation2 + $0xb0] sm:$0xff] %vm171_vm0, %v2586_v0  ;;  %v356_v7 = vld [vmem:[#allocation2 + $0x1] sm:$0xff]  ;;  %v233_v9 = vld [vmem:[%s2695_s18 + $0x30] sm:$0xff] }
  0x14   : > { %197 = vst.msk [vmem:[#allocation2 + $0xc0] sm:$0xff] %vm171_vm0, %v2586_v0  ;;  %198 = vst.msk [vmem:[#allocation2 + $0xc8] sm:$0xff] %vm171_vm0, %v2586_v0  ;;  %420 = vrot.lane.b32.xlu0 %v356_v7, %s2587_s19  ;;  %v234_v10 = vld [vmem:[%s2695_s18 + $0x38] sm:$0xff]  ;;  %v235_v11 = vld [vmem:[%s2695_s18 + $0x40] sm:$0xff] }
  0x15   : > { %200 = vst.msk [vmem:[#allocation2 + $0xd8] sm:$0xff] %vm171_vm0, %v2586_v0  ;;  %201 = vst.msk [vmem:[#allocation2 + $0xe0] sm:$0xff] %vm171_vm0, %v2586_v0  ;;  %v236_v12 = vld [vmem:[%s2695_s18 + $0x48] sm:$0xff]  ;;  %v237_v13 = vld [vmem:[%s2695_s18 + $0x50] sm:$0xff] }
  0x16   : > { %203 = vst.msk [vmem:[#allocation2 + $0xf0] sm:$0xff] %vm171_vm0, %v2586_v0  ;;  %204 = vst.msk [vmem:[#allocation2 + $0xf8] sm:$0xff] %vm171_vm0, %v2586_v0  ;;  %v238_v14 = vld [vmem:[%s2695_s18 + $0x58] sm:$0xff]  ;;  %v239_v15 = vld [vmem:[%s2695_s18 + $0x60] sm:$0xff] }
  0x17   : > { %206 = vst.msk [vmem:[#allocation2 + $0x108] sm:$0xff] %vm171_vm0, %v2586_v0  ;;  %207 = vst.msk [vmem:[#allocation2 + $0x110] sm:$0xff] %vm171_vm0, %v2586_v0  ;;  %v240_v16 = vld [vmem:[%s2695_s18 + $0x68] sm:$0xff]  ;;  %v241_v17 = vld [vmem:[%s2695_s18 + $0x70] sm:$0xff] }
  0x18   : > { %209 = vst.msk [vmem:[#allocation2 + $0x120] sm:$0xff] %vm171_vm0, %v2586_v0  ;;  %210 = vst.msk [vmem:[#allocation2 + $0x128] sm:$0xff] %vm171_vm0, %v2586_v0  ;;  %v242_v18 = vld [vmem:[%s2695_s18 + $0x78] sm:$0xff]  ;;  %v243_v19 = vld [vmem:[%s2695_s18 + $0x80] sm:$0xff] }
  0x19   : > { %212 = vst.msk [vmem:[#allocation2 + $0x138] sm:$0xff] %vm171_vm0, %v2586_v0  ;;  %213 = vst.msk [vmem:[#allocation2 + $0x140] sm:$0xff] %vm171_vm0, %v2586_v0  ;;  %v244_v20 = vld [vmem:[%s2695_s18 + $0x88] sm:$0xff]  ;;  %v245_v21 = vld [vmem:[%s2695_s18 + $0x90] sm:$0xff] }
  0x1a   : > { %215 = vst.msk [vmem:[#allocation2 + $0x150] sm:$0xff] %vm171_vm0, %v2586_v0  ;;  %216 = vst.msk [vmem:[#allocation2 + $0x158] sm:$0xff] %vm171_vm0, %v2586_v0  ;;  %v246_v22 = vld [vmem:[%s2695_s18 + $0x98] sm:$0xff]  ;;  %v247_v23 = vld [vmem:[%s2695_s18 + $0xa0] sm:$0xff] }
  0x1b   : > { %218 = vst.msk [vmem:[#allocation2 + $0x168] sm:$0xff] %vm171_vm0, %v2586_v0  ;;  %219 = vst.msk [vmem:[#allocation2 + $0x170] sm:$0xff] %vm171_vm0, %v2586_v0  ;;  %v248_v24 = vld [vmem:[%s2695_s18 + $0xa8] sm:$0xff]  ;;  %v249_v28 = vld [vmem:[%s2695_s18 + $0xb0] sm:$0xff] }
  0x1c   : > { %221 = vst.msk [vmem:[#allocation2 + $0x180] sm:$0xff] %vm171_vm0, %v2586_v0  ;;  %222 = vst.msk [vmem:[#allocation2 + $0x188] sm:$0xff] %vm171_vm0, %v2586_v0  ;;  %v250_v29 = vld [vmem:[%s2695_s18 + $0xb8] sm:$0xff]  ;;  %v251_v33 = vld [vmem:[%s2695_s18 + $0xc0] sm:$0xff] }
  0x1d   : > { %224 = vst.msk [vmem:[#allocation2 + $0x198] sm:$0xff] %vm171_vm0, %v2586_v0  ;;  %225 = vst.msk [vmem:[#allocation2 + $0x1a0] sm:$0xff] %vm171_vm0, %v2586_v0  ;;  %v252_v34 = vld [vmem:[%s2695_s18 + $0xc8] sm:$0xff]  ;;  %v253_v35 = vld [vmem:[%s2695_s18 + $0xd0] sm:$0xff] }
  0x1e   : > { %175 = vst.msk [vmem:[#allocation2 + $0x10] sm:$0x3] %vm174_vm1, %v2586_v0  ;;  %178 = vst.msk [vmem:[#allocation2 + $0x28] sm:$0x3] %vm174_vm1, %v2586_v0  ;;  %v254_v36 = vld [vmem:[%s2695_s18 + $0xd8] sm:$0xff]  ;;  %v255_v37 = vld [vmem:[%s2695_s18 + $0xe0] sm:$0xff] }
  0x1f   : > { %181 = vst.msk [vmem:[#allocation2 + $0x40] sm:$0x3] %vm174_vm1, %v2586_v0  ;;  %184 = vst.msk [vmem:[#allocation2 + $0x58] sm:$0x3] %vm174_vm1, %v2586_v0  ;;  %v256_v38 = vld [vmem:[%s2695_s18 + $0xe8] sm:$0xff]  ;;  %v292_v45 = vld [vmem:[#allocation2] sm:$0xff] }
  0x20   : > { %187 = vst.msk [vmem:[#allocation2 + $0x70] sm:$0x3] %vm174_vm1, %v2586_v0  ;;  %190 = vst.msk [vmem:[#allocation2 + $0x88] sm:$0x3] %vm174_vm1, %v2586_v0  ;;  %v293_v48 = vld [vmem:[#allocation2 + $0x8] sm:$0xff] }
  0x21   : > { %193 = vst.msk [vmem:[#allocation2 + $0xa0] sm:$0x3] %vm174_vm1, %v2586_v0  ;;  %196 = vst.msk [vmem:[#allocation2 + $0xb8] sm:$0x3] %vm174_vm1, %v2586_v0 }
  0x22   : > { %199 = vst.msk [vmem:[#allocation2 + $0xd0] sm:$0x3] %vm174_vm1, %v2586_v0  ;;  %202 = vst.msk [vmem:[#allocation2 + $0xe8] sm:$0x3] %vm174_vm1, %v2586_v0 }
  0x23   : > { %205 = vst.msk [vmem:[#allocation2 + $0x100] sm:$0x3] %vm174_vm1, %v2586_v0  ;;  %208 = vst.msk [vmem:[#allocation2 + $0x118] sm:$0x3] %vm174_vm1, %v2586_v0 }
  0x24   : > { %211 = vst.msk [vmem:[#allocation2 + $0x130] sm:$0x3] %vm174_vm1, %v2586_v0  ;;  %214 = vst.msk [vmem:[#allocation2 + $0x148] sm:$0x3] %vm174_vm1, %v2586_v0 }
  0x25   : > { %217 = vst.msk [vmem:[#allocation2 + $0x160] sm:$0x3] %vm174_vm1, %v2586_v0  ;;  %220 = vst.msk [vmem:[#allocation2 + $0x178] sm:$0x3] %vm174_vm1, %v2586_v0  ;;  %v357_v8 = vld [vmem:[#allocation2 + $0x9] sm:$0xff] }
  0x26   : > { %223 = vst.msk [vmem:[#allocation2 + $0x190] sm:$0x3] %vm174_vm1, %v2586_v0  ;;  %226 = vst.msk [vmem:[#allocation2 + $0x1a8] sm:$0x3] %vm174_vm1, %v2586_v0  ;;  %422 = vrot.lane.b32.xlu0 %v357_v8, %s2587_s19 }
  0x27   : > { %260 = vst.msk [vmem:[#allocation2 + $0x19] sm:$0xff] %vm171_vm0, %v227_v1  ;;  %261 = vst.msk [vmem:[#allocation2 + $0x21] sm:$0xff] %vm171_vm0, %v228_v2 }
  0x28   : > { %262 = vst.msk [vmem:[#allocation2 + $0x31] sm:$0xff] %vm171_vm0, %v229_v3  ;;  %263 = vst.msk [vmem:[#allocation2 + $0x39] sm:$0xff] %vm171_vm0, %v230_v4 }
  0x29   : > { %264 = vst.msk [vmem:[#allocation2 + $0x49] sm:$0xff] %vm171_vm0, %v231_v5  ;;  %265 = vst.msk [vmem:[#allocation2 + $0x51] sm:$0xff] %vm171_vm0, %v232_v6 }
  0x2a   : > { %266 = vst.msk [vmem:[#allocation2 + $0x61] sm:$0xff] %vm171_vm0, %v233_v9  ;;  %267 = vst.msk [vmem:[#allocation2 + $0x69] sm:$0xff] %vm171_vm0, %v234_v10 }
  0x2b   : > { %268 = vst.msk [vmem:[#allocation2 + $0x79] sm:$0xff] %vm171_vm0, %v235_v11  ;;  %269 = vst.msk [vmem:[#allocation2 + $0x81] sm:$0xff] %vm171_vm0, %v236_v12 }
  0x2c   : > { %270 = vst.msk [vmem:[#allocation2 + $0x91] sm:$0xff] %vm171_vm0, %v237_v13  ;;  %271 = vst.msk [vmem:[#allocation2 + $0x99] sm:$0xff] %vm171_vm0, %v238_v14 }
  0x2d   : > { %272 = vst.msk [vmem:[#allocation2 + $0xa9] sm:$0xff] %vm171_vm0, %v239_v15  ;;  %273 = vst.msk [vmem:[#allocation2 + $0xb1] sm:$0xff] %vm171_vm0, %v240_v16 }
  0x2e   : > { %274 = vst.msk [vmem:[#allocation2 + $0xc1] sm:$0xff] %vm171_vm0, %v241_v17  ;;  %275 = vst.msk [vmem:[#allocation2 + $0xc9] sm:$0xff] %vm171_vm0, %v242_v18  ;;  %v2740_v25 = vld [vmem:[#allocation2 + $0x19] sm:$0xff]  ;;  %v2749_v27 = vld [vmem:[#allocation2 + $0x21] sm:$0xff] }
  0x2f   : > { %276 = vst.msk [vmem:[#allocation2 + $0xd9] sm:$0xff] %vm171_vm0, %v243_v19  ;;  %277 = vst.msk [vmem:[#allocation2 + $0xe1] sm:$0xff] %vm171_vm0, %v244_v20  ;;  %v2742_v26 = vld [vmem:[#allocation2 + $0x31] sm:$0xff]  ;;  %424 = vrot.lane.b32.xlu1 %v2740_v25, %s2587_s19  ;;  %v2761_v31 = vld [vmem:[#allocation2 + $0x39] sm:$0xff] }
  0x30   : > { %278 = vst.msk [vmem:[#allocation2 + $0xf1] sm:$0xff] %vm171_vm0, %v245_v21  ;;  %279 = vst.msk [vmem:[#allocation2 + $0xf9] sm:$0xff] %vm171_vm0, %v246_v22  ;;  %428 = vrot.lane.b32.xlu0 %v2742_v26, %s2587_s19  ;;  %v2757_v30 = vld [vmem:[#allocation2 + $0x49] sm:$0xff]  ;;  %v2778_v39 = vld [vmem:[#allocation2 + $0x51] sm:$0xff] }
  0x31   : > { %280 = vst.msk [vmem:[#allocation2 + $0x109] sm:$0xff] %vm171_vm0, %v247_v23  ;;  %281 = vst.msk [vmem:[#allocation2 + $0x111] sm:$0xff] %vm171_vm0, %v248_v24  ;;  %v2765_v32 = vld [vmem:[#allocation2 + $0x61] sm:$0xff]  ;;  %v2789_v41 = vld [vmem:[#allocation2 + $0x69] sm:$0xff] }
  0x32   : > { %282 = vst.msk [vmem:[#allocation2 + $0x121] sm:$0xff] %vm171_vm0, %v249_v28  ;;  %283 = vst.msk [vmem:[#allocation2 + $0x129] sm:$0xff] %vm171_vm0, %v250_v29  ;;  %v2785_v40 = vld [vmem:[#allocation2 + $0x79] sm:$0xff]  ;;  %v2797_v43 = vld [vmem:[#allocation2 + $0x81] sm:$0xff] }
  0x33   : > { %426 = vrot.lane.b32.xlu1 %v2749_v27, %s2587_s19  ;;  %284 = vst.msk [vmem:[#allocation2 + $0x139] sm:$0xff] %vm171_vm0, %v251_v33  ;;  %285 = vst.msk [vmem:[#allocation2 + $0x141] sm:$0xff] %vm171_vm0, %v252_v34  ;;  %v2793_v42 = vld [vmem:[#allocation2 + $0x91] sm:$0xff]  ;;  %v369_v46 = vld [vmem:[#allocation2 + $0x99] sm:$0xff] }
  0x34   : > { %432 = vrot.lane.b32.xlu0 %v2757_v30, %s2587_s19  ;;  %286 = vst.msk [vmem:[#allocation2 + $0x151] sm:$0xff] %vm171_vm0, %v253_v35  ;;  %287 = vst.msk [vmem:[#allocation2 + $0x159] sm:$0xff] %vm171_vm0, %v254_v36  ;;  %v370_v44 = vld [vmem:[#allocation2 + $0xa9] sm:$0xff]  ;;  %v2804_v47 = vld [vmem:[#allocation2 + $0x18] sm:$0xff] }
  0x35   : > { %288 = vst.msk [vmem:[#allocation2 + $0x169] sm:$0xff] %vm171_vm0, %v255_v37  ;;  %289 = vst.msk [vmem:[#allocation2 + $0x171] sm:$0xff] %vm171_vm0, %v256_v38  ;;  %v2810_v49 = vld [vmem:[#allocation2 + $0x20] sm:$0xff]  ;;  %v2812_v50 = vld [vmem:[#allocation2 + $0x30] sm:$0xff] }
  0x36   : > { %324 = vst.msk [vmem:[#allocation3] sm:$0xff] %vm171_vm0, %v292_v45  ;;  %326 = vst.msk [vmem:[#allocation3 + $0x10] sm:$0xff] %vm171_vm0, %v2804_v47  ;;  %v372_v51 = vld [vmem:[#allocation2 + $0xc1] sm:$0xff]  ;;  %v2818_v52 = vld [vmem:[#allocation2 + $0x38] sm:$0xff] }
  0x37   : > { %430 = vrot.lane.b32.xlu1 %v2761_v31, %s2587_s19  ;;  %325 = vst.msk [vmem:[#allocation3 + $0x8] sm:$0xff] %vm171_vm0, %v293_v48  ;;  %327 = vst.msk [vmem:[#allocation3 + $0x18] sm:$0xff] %vm171_vm0, %v2810_v49  ;;  %v371_v53 = vld [vmem:[#allocation2 + $0xb1] sm:$0xff]  ;;  %v2823_v54 = vld [vmem:[#allocation2 + $0x48] sm:$0xff] }
  0x38   : > { %436 = vrot.lane.b32.xlu0 %v2765_v32, %s2587_s19  ;;  %328 = vst.msk [vmem:[#allocation3 + $0x20] sm:$0xff] %vm171_vm0, %v2812_v50  ;;  %329 = vst.msk [vmem:[#allocation3 + $0x28] sm:$0xff] %vm171_vm0, %v2818_v52  ;;  %v2825_v55 = vld [vmem:[#allocation2 + $0x50] sm:$0xff]  ;;  %v2827_v56 = vld [vmem:[#allocation2 + $0xd9] sm:$0xff] }
  0x39   : > { %330 = vst.msk [vmem:[#allocation3 + $0x30] sm:$0xff] %vm171_vm0, %v2823_v54  ;;  %331 = vst.msk [vmem:[#allocation3 + $0x38] sm:$0xff] %vm171_vm0, %v2825_v55  ;;  %v2833_v57 = vld [vmem:[#allocation2 + $0x60] sm:$0xff]  ;;  %v2835_v58 = vld [vmem:[#allocation2 + $0x68] sm:$0xff] }
  0x3a   : > { %v2837_v59 = vld [vmem:[#allocation2 + $0x78] sm:$0xff]  ;;  %332 = vst.msk [vmem:[#allocation3 + $0x40] sm:$0xff] %vm171_vm0, %v2833_v57  ;;  %333 = vst.msk [vmem:[#allocation3 + $0x48] sm:$0xff] %vm171_vm0, %v2835_v58  ;;  %v2846_v60 = vld [vmem:[#allocation2 + $0x80] sm:$0xff] }
  0x3b   : > { %434 = vrot.lane.b32.xlu1 %v2778_v39, %s2587_s19  ;;  %334 = vst.msk [vmem:[#allocation3 + $0x50] sm:$0xff] %vm171_vm0, %v2837_v59  ;;  %v2848_v61 = vld [vmem:[#allocation2 + $0x90] sm:$0xff]  ;;  %v2850_v62 = vld [vmem:[#allocation2 + $0x98] sm:$0xff]  ;;  %335 = vst.msk [vmem:[#allocation3 + $0x58] sm:$0xff] %vm171_vm0, %v2846_v60 }
  0x3c   : > { %440 = vrot.lane.b32.xlu0 %v2785_v40, %s2587_s19  ;;  %v373_v63 = vld [vmem:[#allocation2 + $0xc9] sm:$0xff]  ;;  %336 = vst.msk [vmem:[#allocation3 + $0x60] sm:$0xff] %vm171_vm0, %v2848_v61  ;;  %337 = vst.msk [vmem:[#allocation3 + $0x68] sm:$0xff] %vm171_vm0, %v2850_v62  ;;  %v2862_v2 = vld [vmem:[#allocation2 + $0xc0] sm:$0xff] }
  0x3d   : > { %v2858_v0 = vld [vmem:[#allocation2 + $0xa8] sm:$0xff]  ;;  %v2860_v1 = vld [vmem:[#allocation2 + $0xb0] sm:$0xff]  ;;  %340 = vst.msk [vmem:[#allocation3 + $0x80] sm:$0xff] %vm171_vm0, %v2862_v2  ;;  %v2873_v4 = vld [vmem:[#allocation2 + $0xd8] sm:$0xff] }
  0x3e   : > { %338 = vst.msk [vmem:[#allocation3 + $0x70] sm:$0xff] %vm171_vm0, %v2858_v0  ;;  %339 = vst.msk [vmem:[#allocation3 + $0x78] sm:$0xff] %vm171_vm0, %v2860_v1  ;;  %v2871_v3 = vld [vmem:[#allocation2 + $0xc8] sm:$0xff]  ;;  %v2875_v5 = vld [vmem:[#allocation2 + $0xe0] sm:$0xff] }
  0x3f   : > { %438 = vrot.lane.b32.xlu1 %v2789_v41, %s2587_s19  ;;  %341 = vst.msk [vmem:[#allocation3 + $0x88] sm:$0xff] %vm171_vm0, %v2871_v3  ;;  %342 = vst.msk [vmem:[#allocation3 + $0x90] sm:$0xff] %vm171_vm0, %v2873_v4  ;;  %v2883_v6 = vld [vmem:[#allocation2 + $0xf0] sm:$0xff]  ;;  %v2885_v7 = vld [vmem:[#allocation2 + $0xf8] sm:$0xff] }
  0x40   : > { %444 = vrot.lane.b32.xlu0 %v2793_v42, %s2587_s19  ;;  %343 = vst.msk [vmem:[#allocation3 + $0x98] sm:$0xff] %vm171_vm0, %v2875_v5  ;;  %v2887_v8 = vld [vmem:[#allocation2 + $0x108] sm:$0xff]  ;;  %344 = vst.msk [vmem:[#allocation3 + $0xa0] sm:$0xff] %vm171_vm0, %v2883_v6  ;;  %v2897_v9 = vld [vmem:[#allocation2 + $0x110] sm:$0xff] }
  0x41   : > { %345 = vst.msk [vmem:[#allocation3 + $0xa8] sm:$0xff] %vm171_vm0, %v2885_v7  ;;  %346 = vst.msk [vmem:[#allocation3 + $0xb0] sm:$0xff] %vm171_vm0, %v2887_v8  ;;  %v2899_v10 = vld [vmem:[#allocation2 + $0xf1] sm:$0xff]  ;;  %v2903_v11 = vld [vmem:[#allocation2 + $0x120] sm:$0xff] }
  0x42   : > { %347 = vst.msk [vmem:[#allocation3 + $0xb8] sm:$0xff] %vm171_vm0, %v2897_v9  ;;  %348 = vst.msk [vmem:[#allocation3 + $0xc0] sm:$0xff] %vm171_vm0, %v2903_v11  ;;  %v2908_v12 = vld [vmem:[#allocation2 + $0x128] sm:$0xff]  ;;  %v2918_v15 = vld [vmem:[#allocation2 + $0x138] sm:$0xff] }
  0x43   : > { %442 = vrot.lane.b32.xlu1 %v2797_v43, %s2587_s19  ;;  %v2910_v13 = vld [vmem:[#allocation2 + $0xe1] sm:$0xff]  ;;  %349 = vst.msk [vmem:[#allocation3 + $0xc8] sm:$0xff] %vm171_vm0, %v2908_v12  ;;  %v2916_v14 = vld [vmem:[#allocation2 + $0x109] sm:$0xff]  ;;  %350 = vst.msk [vmem:[#allocation3 + $0xd0] sm:$0xff] %vm171_vm0, %v2918_v15 }
  0x44   : > { %448 = vrot.lane.b32.xlu0 %v370_v44, %s2587_s19  ;;  %v2924_v16 = vld [vmem:[#allocation2 + $0x140] sm:$0xff]  ;;  %v2932_v19 = vld [vmem:[#allocation2 + $0x150] sm:$0xff]  ;;  %v2938_v20 = vld [vmem:[#allocation2 + $0x158] sm:$0xff] }
  0x45   : > { %v2926_v17 = vld [vmem:[#allocation2 + $0xf9] sm:$0xff]  ;;  %351 = vst.msk [vmem:[#allocation3 + $0xd8] sm:$0xff] %vm171_vm0, %v2924_v16  ;;  %v380_v18 = vld [vmem:[#allocation2 + $0x121] sm:$0xff]  ;;  %352 = vst.msk [vmem:[#allocation3 + $0xe0] sm:$0xff] %vm171_vm0, %v2932_v19 }
  0x46   : > { %v2940_v21 = vld [vmem:[#allocation2 + $0x111] sm:$0xff]  ;;  %353 = vst.msk [vmem:[#allocation3 + $0xe8] sm:$0xff] %vm171_vm0, %v2938_v20  ;;  %v382_v22 = vld [vmem:[#allocation2 + $0x139] sm:$0xff]  ;;  %v2945_v23 = vld [vmem:[#allocation2 + $0x168] sm:$0xff] }
  0x47   : > { %446 = vrot.lane.b32.xlu1 %v369_v46, %s2587_s19  ;;  %3770 = vst [vmem:[#allocation4_spill] sm:$0xff] %v2940_v21  ;;  %354 = vst.msk [vmem:[#allocation3 + $0xf0] sm:$0xff] %vm171_vm0, %v2945_v23  ;;  %v2951_v24 = vld [vmem:[#allocation2 + $0x170] sm:$0xff]  ;;  %v383_v33 = vld [vmem:[#allocation2 + $0x141] sm:$0xff] }
  0x48   : > { %452 = vrot.lane.b32.xlu0 %v372_v51, %s2587_s19  ;;  %v381_v28 = vld [vmem:[#allocation2 + $0x129] sm:$0xff]  ;;  %355 = vst.msk [vmem:[#allocation3 + $0xf8] sm:$0xff] %vm171_vm0, %v2951_v24  ;;  %v384_v29 = vld [vmem:[#allocation2 + $0x151] sm:$0xff]  ;;  %v385_v37 = vld [vmem:[#allocation2 + $0x159] sm:$0xff] }
  0x49   : > { %v257_v34 = vld [vmem:[%s2695_s18 + $0xf0] sm:$0xff]  ;;  %v258_v36 = vld [vmem:[%s2695_s18 + $0xf8] sm:$0xff]  ;;  %v549_v38 = vld [vmem:[#allocation2 + $0x2] sm:$0xff] }
  0x4a   : > { %290 = vst.msk [vmem:[#allocation2 + $0x181] sm:$0xff] %vm171_vm0, %v257_v34  ;;  %v386_v35 = vld [vmem:[#allocation2 + $0x169] sm:$0xff]  ;;  %291 = vst.msk [vmem:[#allocation2 + $0x189] sm:$0xff] %vm171_vm0, %v258_v36  ;;  %v387_v44 = vld [vmem:[#allocation2 + $0x171] sm:$0xff] }
  0x4b   : > { %450 = vrot.lane.b32.xlu1 %v371_v53, %s2587_s19  ;;  %v2966_v45 = vld [vmem:[#allocation2 + $0x1a] sm:$0xff]  ;;  %v550_v46 = vld [vmem:[#allocation2 + $0xa] sm:$0xff]  ;;  %v2971_v48 = vld [vmem:[#allocation2 + $0x32] sm:$0xff] }
  0x4c   : > { %456 = vrot.lane.b32.xlu0 %v2827_v56, %s2587_s19  ;;  %v2974_v51 = vld [vmem:[#allocation2 + $0x22] sm:$0xff]  ;;  %v2978_v53 = vld [vmem:[#allocation2 + $0x4a] sm:$0xff]  ;;  %v562_v36 = vld [vmem:[#allocation2 + $0x9a] sm:$0xff] }
  0x4d   : > { %v560_v34 = vld [vmem:[#allocation2 + $0x82] sm:$0xff] }
  0x4f   : > { %454 = vrot.lane.b32.xlu1 %v373_v63, %s2587_s19  ;;  %v2982_v63 = vld [vmem:[#allocation2 + $0x3a] sm:$0xff] }
  0x50   : > { %460 = vrot.lane.b32.xlu0 %v2899_v10, %s2587_s19 }
  0x53   : > { %458 = vrot.lane.b32.xlu1 %v2910_v13, %s2587_s19 }
  0x54   : > { %464 = vrot.lane.b32.xlu0 %v2916_v14, %s2587_s19 }
  0x57   : > { %462 = vrot.lane.b32.xlu1 %v2926_v17, %s2587_s19 }
  0x58   : > { %468 = vrot.lane.b32.xlu0 %v380_v18, %s2587_s19  ;;  %v557_v18 = vld [vmem:[#allocation2 + $0x62] sm:$0xff] }
  0x5b   : > { %466 = vrot.lane.b32.xlu1 %v2940_v21, %s2587_s19 }
  0x5c   : > { %472 = vrot.lane.b32.xlu0 %v382_v22, %s2587_s19  ;;  %v2988_v22 = vld [vmem:[#allocation2 + $0x52] sm:$0xff] }
  0x5d   : > { %3771 = vst [vmem:[#allocation5_spill] sm:$0xff] %v2988_v22 }
  0x5f   : > { %470 = vrot.lane.b32.xlu1 %v381_v28, %s2587_s19  ;;  %v559_v28 = vld [vmem:[#allocation2 + $0x7a] sm:$0xff] }
  0x60   : > { %476 = vrot.lane.b32.xlu0 %v384_v29, %s2587_s19  ;;  %v558_v29 = vld [vmem:[#allocation2 + $0x6a] sm:$0xff] }
  0x63   : > { %474 = vrot.lane.b32.xlu1 %v383_v33, %s2587_s19  ;;  %v561_v33 = vld [vmem:[#allocation2 + $0x92] sm:$0xff] }
  0x64   : > { %480 = vrot.lane.b32.xlu0 %v386_v35, %s2587_s19  ;;  %v563_v35 = vld [vmem:[#allocation2 + $0xaa] sm:$0xff] }
  0x67   : > { %478 = vrot.lane.b32.xlu1 %v385_v37, %s2587_s19  ;;  %v565_v37 = vld [vmem:[#allocation2 + $0xc2] sm:$0xff] }
  0x68   : > { %613 = vrot.lane.b32.xlu0 %v549_v38, %s2588_s20  ;;  %v564_v38 = vld [vmem:[#allocation2 + $0xb2] sm:$0xff] }
  0x6b   : > { %482 = vrot.lane.b32.xlu1 %v387_v44, %s2587_s19  ;;  %v3000_v44 = vld [vmem:[#allocation2 + $0xda] sm:$0xff] }
  0x6c   : > { %617 = vrot.lane.b32.xlu0 %v2966_v45, %s2588_s20 }
  0x6f   : > { %615 = vrot.lane.b32.xlu1 %v550_v46, %s2588_s20  ;;  %v566_v46 = vld [vmem:[#allocation2 + $0xca] sm:$0xff] }
  0x70   : > { %621 = vrot.lane.b32.xlu0 %v2971_v48, %s2588_s20 }
  0x73   : > { %619 = vrot.lane.b32.xlu1 %v2974_v51, %s2588_s20 }
  0x74   : > { %625 = vrot.lane.b32.xlu0 %v2978_v53, %s2588_s20 }
  0x77   : > { %623 = vrot.lane.b32.xlu1 %v2982_v63, %s2588_s20 }
  0x78   : > { %629 = vrot.lane.b32.xlu0 %v557_v18, %s2588_s20  ;;  %v3005_v18 = vld [vmem:[#allocation2 + $0xf2] sm:$0xff] }
  0x7b   : > { %627 = vrot.lane.b32.xlu1 %v2988_v22, %s2588_s20 }
  0x7c   : > { %633 = vrot.lane.b32.xlu0 %v559_v28, %s2588_s20  ;;  %v3008_v28 = vld [vmem:[#allocation2 + $0xe2] sm:$0xff] }
  0x7f   : > { %631 = vrot.lane.b32.xlu1 %v558_v29, %s2588_s20  ;;  %v3012_v29 = vld [vmem:[#allocation2 + $0x10a] sm:$0xff] }
  0x80   : > { %637 = vrot.lane.b32.xlu0 %v561_v33, %s2588_s20  ;;  %3772 = vst [vmem:[#allocation6_spill] sm:$0xff] %v3012_v29  ;;  %v3016_v33 = vld [vmem:[#allocation2 + $0xfa] sm:$0xff] }
  0x83   : > { %635 = vrot.lane.b32.xlu1 %v560_v34, %s2588_s20  ;;  %v3020_v34 = vld [vmem:[#allocation2 + $0x122] sm:$0xff] }
  0x84   : > { %641 = vrot.lane.b32.xlu0 %v563_v35, %s2588_s20  ;;  %3773 = vst [vmem:[#allocation7_spill] sm:$0xff] %v3020_v34  ;;  %v3024_v35 = vld [vmem:[#allocation2 + $0x112] sm:$0xff] }
  0x85   : > { %3774 = vst [vmem:[#allocation8_spill] sm:$0xff] %v3024_v35 }
  0x87   : > { %639 = vrot.lane.b32.xlu1 %v562_v36, %s2588_s20  ;;  %v575_v36 = vld [vmem:[#allocation2 + $0x13a] sm:$0xff] }
  0x88   : > { %645 = vrot.lane.b32.xlu0 %v565_v37, %s2588_s20  ;;  %v421_v37 = vpop.permute.xlu0 %420 }
  0x89   : > { %517 = vst.msk [vmem:[#allocation3] sm:$0xff] %vm516_vm2, %v421_v37 }
  0x8b   : > { %643 = vrot.lane.b32.xlu1 %v564_v38, %s2588_s20  ;;  %v3031_v38 = vld [vmem:[#allocation2 + $0x12a] sm:$0xff] }
  0x8c   : > { %649 = vrot.lane.b32.xlu0 %v3000_v44, %s2588_s20  ;;  %3775 = vst [vmem:[#allocation9_spill] sm:$0xff] %v3031_v38 }
  0x8f   : > { %647 = vrot.lane.b32.xlu1 %v566_v46, %s2588_s20  ;;  %v577_v46 = vld [vmem:[#allocation2 + $0x152] sm:$0xff] }
  0x90   : > { %653 = vrot.lane.b32.xlu0 %v3005_v18, %s2588_s20 }
  0x93   : > { %651 = vrot.lane.b32.xlu1 %v3008_v28, %s2588_s20 }
  0x94   : > { %657 = vrot.lane.b32.xlu0 %v3012_v29, %s2588_s20 }
  0x97   : > { %655 = vrot.lane.b32.xlu1 %v3016_v33, %s2588_s20 }
  0x98   : > { %661 = vrot.lane.b32.xlu0 %v3020_v34, %s2588_s20  ;;  %v423_v22 = vpop.permute.xlu0 %422  ;;  %v576_v34 = vld [vmem:[#allocation2 + $0x142] sm:$0xff] }
  0x99   : > { %518 = vst.msk [vmem:[#allocation3 + $0x8] sm:$0xff] %vm516_vm2, %v423_v22 }
  0x9b   : > { %659 = vrot.lane.b32.xlu1 %v3024_v35, %s2588_s20  ;;  %v579_v35 = vld [vmem:[#allocation2 + $0x16a] sm:$0xff] }
  0x9c   : > { %665 = vrot.lane.b32.xlu0 %v575_v36, %s2588_s20  ;;  %v578_v36 = vld [vmem:[#allocation2 + $0x15a] sm:$0xff] }
  0x9f   : > { %663 = vrot.lane.b32.xlu1 %v3031_v38, %s2588_s20 }
  0xa0   : > { %669 = vrot.lane.b32.xlu0 %v577_v46, %s2588_s20  ;;  %v580_v46 = vld [vmem:[#allocation2 + $0x172] sm:$0xff] }
  0xa1   : > { %v425_v29 = vpop.permute.xlu1 %424 }
  0xa2   : > { %519 = vst.msk [vmem:[#allocation3 + $0x10] sm:$0xff] %vm516_vm2, %v425_v29  ;;  %v429_v37 = vpop.permute.xlu0 %428 }
  0xa3   : > { %667 = vrot.lane.b32.xlu1 %v576_v34, %s2588_s20  ;;  %521 = vst.msk [vmem:[#allocation3 + $0x20] sm:$0xff] %vm516_vm2, %v429_v37 }
  0xa4   : > { %673 = vrot.lane.b32.xlu0 %v579_v35, %s2588_s20 }
  0xa5   : > { %v427_v21 = vpop.permute.xlu1 %426 }
  0xa6   : > { %520 = vst.msk [vmem:[#allocation3 + $0x18] sm:$0xff] %vm516_vm2, %v427_v21  ;;  %v433_v22 = vpop.permute.xlu0 %432 }
  0xa7   : > { %671 = vrot.lane.b32.xlu1 %v578_v36, %s2588_s20  ;;  %523 = vst.msk [vmem:[#allocation3 + $0x30] sm:$0xff] %vm516_vm2, %v433_v22 }
  0xa8   : > { %806 = vrot.lane.b32.xlu0 %v2804_v47, %s2589_s21 }
  0xa9   : > { %v431_v38 = vpop.permute.xlu1 %430 }
  0xaa   : > { %522 = vst.msk [vmem:[#allocation3 + $0x28] sm:$0xff] %vm516_vm2, %v431_v38  ;;  %v437_v29 = vpop.permute.xlu0 %436 }
  0xab   : > { %675 = vrot.lane.b32.xlu1 %v580_v46, %s2588_s20  ;;  %525 = vst.msk [vmem:[#allocation3 + $0x40] sm:$0xff] %vm516_vm2, %v437_v29 }
  0xac   : > { %810 = vrot.lane.b32.xlu0 %v2812_v50, %s2589_s21 }
  0xad   : > { %v435_v34 = vpop.permute.xlu1 %434 }
  0xae   : > { %524 = vst.msk [vmem:[#allocation3 + $0x38] sm:$0xff] %vm516_vm2, %v435_v34  ;;  %v441_v21 = vpop.permute.xlu0 %440 }
  0xaf   : > { %808 = vrot.lane.b32.xlu1 %v2810_v49, %s2589_s21  ;;  %527 = vst.msk [vmem:[#allocation3 + $0x50] sm:$0xff] %vm516_vm2, %v441_v21 }
  0xb0   : > { %814 = vrot.lane.b32.xlu0 %v2823_v54, %s2589_s21 }
  0xb1   : > { %v439_v47 = vpop.permute.xlu1 %438 }
  0xb2   : > { %526 = vst.msk [vmem:[#allocation3 + $0x48] sm:$0xff] %vm516_vm2, %v439_v47  ;;  %v445_v35 = vpop.permute.xlu0 %444 }
  0xb3   : > { %812 = vrot.lane.b32.xlu1 %v2818_v52, %s2589_s21  ;;  %529 = vst.msk [vmem:[#allocation3 + $0x60] sm:$0xff] %vm516_vm2, %v445_v35 }
  0xb4   : > { %818 = vrot.lane.b32.xlu0 %v2833_v57, %s2589_s21 }
  0xb5   : > { %v443_v38 = vpop.permute.xlu1 %442 }
  0xb6   : > { %528 = vst.msk [vmem:[#allocation3 + $0x58] sm:$0xff] %vm516_vm2, %v443_v38  ;;  %v449_v49 = vpop.permute.xlu0 %448 }
  0xb7   : > { %816 = vrot.lane.b32.xlu1 %v2825_v55, %s2589_s21  ;;  %531 = vst.msk [vmem:[#allocation3 + $0x70] sm:$0xff] %vm516_vm2, %v449_v49 }
  0xb8   : > { %822 = vrot.lane.b32.xlu0 %v2837_v59, %s2589_s21 }
  0xb9   : > { %v447_v37 = vpop.permute.xlu1 %446 }
  0xba   : > { %530 = vst.msk [vmem:[#allocation3 + $0x68] sm:$0xff] %vm516_vm2, %v447_v37  ;;  %v453_v36 = vpop.permute.xlu0 %452 }
  0xbb   : > { %820 = vrot.lane.b32.xlu1 %v2835_v58, %s2589_s21  ;;  %533 = vst.msk [vmem:[#allocation3 + $0x80] sm:$0xff] %vm516_vm2, %v453_v36 }
  0xbc   : > { %826 = vrot.lane.b32.xlu0 %v2848_v61, %s2589_s21 }
  0xbd   : > { %v451_v22 = vpop.permute.xlu1 %450 }
  0xbe   : > { %532 = vst.msk [vmem:[#allocation3 + $0x78] sm:$0xff] %vm516_vm2, %v451_v22  ;;  %v457_v46 = vpop.permute.xlu0 %456  ;;  %v772_v22 = vld [vmem:[#allocation2 + $0x180] sm:$0xff] }
  0xbf   : > { %824 = vrot.lane.b32.xlu1 %v2846_v60, %s2589_s21  ;;  %535 = vst.msk [vmem:[#allocation3 + $0x90] sm:$0xff] %vm516_vm2, %v457_v46 }
  0xc0   : > { %830 = vrot.lane.b32.xlu0 %v2858_v0, %s2589_s21 }
  0xc1   : > { %v455_v29 = vpop.permute.xlu1 %454 }
  0xc2   : > { %534 = vst.msk [vmem:[#allocation3 + $0x88] sm:$0xff] %vm516_vm2, %v455_v29  ;;  %v461_v34 = vpop.permute.xlu0 %460 }
  0xc3   : > { %828 = vrot.lane.b32.xlu1 %v2850_v62, %s2589_s21  ;;  %537 = vst.msk [vmem:[#allocation3 + $0xa0] sm:$0xff] %vm516_vm2, %v461_v34 }
  0xc4   : > { %834 = vrot.lane.b32.xlu0 %v2862_v2, %s2589_s21 }
  0xc5   : > { %v459_v61 = vpop.permute.xlu1 %458 }
  0xc6   : > { %536 = vst.msk [vmem:[#allocation3 + $0x98] sm:$0xff] %vm516_vm2, %v459_v61  ;;  %v465_v21 = vpop.permute.xlu0 %464 }
  0xc7   : > { %832 = vrot.lane.b32.xlu1 %v2860_v1, %s2589_s21  ;;  %539 = vst.msk [vmem:[#allocation3 + $0xb0] sm:$0xff] %vm516_vm2, %v465_v21 }
  0xc8   : > { %838 = vrot.lane.b32.xlu0 %v2873_v4, %s2589_s21 }
  0xc9   : > { %v463_v0 = vpop.permute.xlu1 %462 }
  0xca   : > { %538 = vst.msk [vmem:[#allocation3 + $0xa8] sm:$0xff] %vm516_vm2, %v463_v0  ;;  %v469_v62 = vpop.permute.xlu0 %468 }
  0xcb   : > { %836 = vrot.lane.b32.xlu1 %v2871_v3, %s2589_s21  ;;  %541 = vst.msk [vmem:[#allocation3 + $0xc0] sm:$0xff] %vm516_vm2, %v469_v62 }
  0xcc   : > { %842 = vrot.lane.b32.xlu0 %v2883_v6, %s2589_s21 }
  0xcd   : > { %v467_v2 = vpop.permute.xlu1 %466 }
  0xce   : > { %540 = vst.msk [vmem:[#allocation3 + $0xb8] sm:$0xff] %vm516_vm2, %v467_v2  ;;  %v473_v1 = vpop.permute.xlu0 %472 }
  0xcf   : > { %840 = vrot.lane.b32.xlu1 %v2875_v5, %s2589_s21  ;;  %543 = vst.msk [vmem:[#allocation3 + $0xd0] sm:$0xff] %vm516_vm2, %v473_v1 }
  0xd0   : > { %846 = vrot.lane.b32.xlu0 %v2887_v8, %s2589_s21 }
  0xd1   : > { %v471_v4 = vpop.permute.xlu1 %470 }
  0xd2   : > { %542 = vst.msk [vmem:[#allocation3 + $0xc8] sm:$0xff] %vm516_vm2, %v471_v4  ;;  %v477_v3 = vpop.permute.xlu0 %476  ;;  %v1939_v4 = vld [vmem:[%s3754_s1 + $0x30] sm:$0xff] }
  0xd3   : > { %844 = vrot.lane.b32.xlu1 %v2885_v7, %s2589_s21  ;;  %545 = vst.msk [vmem:[#allocation3 + $0xe0] sm:$0xff] %vm516_vm2, %v477_v3 }
  0xd4   : > { %850 = vrot.lane.b32.xlu0 %v2903_v11, %s2589_s21 }
  0xd5   : > { %v475_v47 = vpop.permute.xlu1 %474 }
  0xd6   : > { %544 = vst.msk [vmem:[#allocation3 + $0xd8] sm:$0xff] %vm516_vm2, %v475_v47  ;;  %v481_v5 = vpop.permute.xlu0 %480 }
  0xd7   : > { %848 = vrot.lane.b32.xlu1 %v2897_v9, %s2589_s21  ;;  %547 = vst.msk [vmem:[#allocation3 + $0xf0] sm:$0xff] %vm516_vm2, %v481_v5  ;;  %v1937_v5 = vld [vmem:[%s3754_s1 + $0x20] sm:$0xff] }
  0xd8   : > { %854 = vrot.lane.b32.xlu0 %v2918_v15, %s2589_s21 }
  0xd9   : > { %v479_v35 = vpop.permute.xlu1 %478 }
  0xda   : > { %546 = vst.msk [vmem:[#allocation3 + $0xe8] sm:$0xff] %vm516_vm2, %v479_v35  ;;  %v614_v38 = vpop.permute.xlu0 %613 }
  0xdb   : > { %852 = vrot.lane.b32.xlu1 %v2908_v12, %s2589_s21  ;;  %710 = vst.msk [vmem:[#allocation3] sm:$0xff] %vm709_vm3, %v614_v38  ;;  %v1935_v38 = vld [vmem:[%s3754_s1 + $0x10] sm:$0xff] }
  0xdc   : > { %858 = vrot.lane.b32.xlu0 %v2932_v19, %s2589_s21 }
  0xdd   : > { %v483_v49 = vpop.permute.xlu1 %482 }
  0xde   : > { %548 = vst.msk [vmem:[#allocation3 + $0xf8] sm:$0xff] %vm516_vm2, %v483_v49  ;;  %v618_v37 = vpop.permute.xlu0 %617 }
  0xdf   : > { %856 = vrot.lane.b32.xlu1 %v2924_v16, %s2589_s21  ;;  %712 = vst.msk [vmem:[#allocation3 + $0x10] sm:$0xff] %vm709_vm3, %v618_v37 }
  0xe0   : > { %862 = vrot.lane.b32.xlu0 %v2945_v23, %s2589_s21  ;;  %v773_v23 = vld [vmem:[#allocation2 + $0x188] sm:$0xff] }
  0xe1   : > { %v616_v36 = vpop.permute.xlu1 %615 }
  0xe2   : > { %711 = vst.msk [vmem:[#allocation3 + $0x8] sm:$0xff] %vm709_vm3, %v616_v36  ;;  %v622_v46 = vpop.permute.xlu0 %621  ;;  %v1934_v36 = vld [vmem:[%s3754_s1 + $0x8] sm:$0xff] }
  0xe3   : > { %860 = vrot.lane.b32.xlu1 %v2938_v20, %s2589_s21  ;;  %714 = vst.msk [vmem:[#allocation3 + $0x20] sm:$0xff] %vm709_vm3, %v622_v46 }
  0xe4   : > { %866 = vrot.lane.b32.xlu0 %v772_v22, %s2589_s21 }
  0xe5   : > { %v620_v29 = vpop.permute.xlu1 %619 }
  0xe6   : > { %713 = vst.msk [vmem:[#allocation3 + $0x18] sm:$0xff] %vm709_vm3, %v620_v29  ;;  %v626_v34 = vpop.permute.xlu0 %625 }
  0xe7   : > { %864 = vrot.lane.b32.xlu1 %v2951_v24, %s2589_s21  ;;  %716 = vst.msk [vmem:[#allocation3 + $0x30] sm:$0xff] %vm709_vm3, %v626_v34 }
  0xe8   : > { %999 = vrot.lane.b32.xlu0 %v2740_v25, %s2590_s22 }
  0xe9   : > { %v624_v61 = vpop.permute.xlu1 %623 }
  0xea   : > { %715 = vst.msk [vmem:[#allocation3 + $0x28] sm:$0xff] %vm709_vm3, %v624_v61  ;;  %v630_v21 = vpop.permute.xlu0 %629 }
  0xeb   : > { %868 = vrot.lane.b32.xlu1 %v773_v23, %s2589_s21  ;;  %718 = vst.msk [vmem:[#allocation3 + $0x40] sm:$0xff] %vm709_vm3, %v630_v21 }
  0xec   : > { %1003 = vrot.lane.b32.xlu0 %v2742_v26, %s2590_s22 }
  0xed   : > { %v628_v0 = vpop.permute.xlu1 %627 }
  0xee   : > { %717 = vst.msk [vmem:[#allocation3 + $0x38] sm:$0xff] %vm709_vm3, %v628_v0  ;;  %v634_v24 = vpop.permute.xlu0 %633 }
  0xef   : > { %1001 = vrot.lane.b32.xlu1 %v2749_v27, %s2590_s22  ;;  %720 = vst.msk [vmem:[#allocation3 + $0x50] sm:$0xff] %vm709_vm3, %v634_v24 }
  0xf0   : > { %1007 = vrot.lane.b32.xlu0 %v2757_v30, %s2590_s22 }
  0xf1   : > { %v632_v25 = vpop.permute.xlu1 %631 }
  0xf2   : > { %719 = vst.msk [vmem:[#allocation3 + $0x48] sm:$0xff] %vm709_vm3, %v632_v25  ;;  %v638_v62 = vpop.permute.xlu0 %637  ;;  %v3776_v25 = vld [vmem:[#allocation4_spill] sm:$0xff] }
  0xf3   : > { %1005 = vrot.lane.b32.xlu1 %v2761_v31, %s2590_s22  ;;  %722 = vst.msk [vmem:[#allocation3 + $0x60] sm:$0xff] %vm709_vm3, %v638_v62 }
  0xf4   : > { %1011 = vrot.lane.b32.xlu0 %v2765_v32, %s2590_s22 }
  0xf5   : > { %v636_v2 = vpop.permute.xlu1 %635 }
  0xf6   : > { %721 = vst.msk [vmem:[#allocation3 + $0x58] sm:$0xff] %vm709_vm3, %v636_v2  ;;  %v642_v27 = vpop.permute.xlu0 %641 }
  0xf7   : > { %1009 = vrot.lane.b32.xlu1 %v2778_v39, %s2590_s22  ;;  %724 = vst.msk [vmem:[#allocation3 + $0x70] sm:$0xff] %vm709_vm3, %v642_v27 }
  0xf8   : > { %1015 = vrot.lane.b32.xlu0 %v2785_v40, %s2590_s22 }
  0xf9   : > { %v640_v30 = vpop.permute.xlu1 %639 }
  0xfa   : > { %723 = vst.msk [vmem:[#allocation3 + $0x68] sm:$0xff] %vm709_vm3, %v640_v30  ;;  %v646_v1 = vpop.permute.xlu0 %645 }
  0xfb   : > { %1013 = vrot.lane.b32.xlu1 %v2789_v41, %s2590_s22  ;;  %726 = vst.msk [vmem:[#allocation3 + $0x80] sm:$0xff] %vm709_vm3, %v646_v1 }
  0xfc   : > { %1019 = vrot.lane.b32.xlu0 %v2793_v42, %s2590_s22 }
  0xfd   : > { %v644_v32 = vpop.permute.xlu1 %643 }
  0xfe   : > { %725 = vst.msk [vmem:[#allocation3 + $0x78] sm:$0xff] %vm709_vm3, %v644_v32  ;;  %v650_v39 = vpop.permute.xlu0 %649 }
  0xff   : > { %1017 = vrot.lane.b32.xlu1 %v2797_v43, %s2590_s22  ;;  %728 = vst.msk [vmem:[#allocation3 + $0x90] sm:$0xff] %vm709_vm3, %v650_v39  ;;  %v3778_v39 = vld [vmem:[#allocation8_spill] sm:$0xff] }
 0x100   : > { %1033 = vrot.lane.b32.xlu0 %v2910_v13, %s2590_s22 }
 0x101   : > { %v648_v40 = vpop.permute.xlu1 %647 }
 0x102   : > { %727 = vst.msk [vmem:[#allocation3 + $0x88] sm:$0xff] %vm709_vm3, %v648_v40  ;;  %v654_v41 = vpop.permute.xlu0 %653  ;;  %v3779_v40 = vld [vmem:[#allocation5_spill] sm:$0xff] }
 0x103   : > { %1031 = vrot.lane.b32.xlu1 %v2827_v56, %s2590_s22  ;;  %730 = vst.msk [vmem:[#allocation3 + $0xa0] sm:$0xff] %vm709_vm3, %v654_v41 }
 0x104   : > { %1224 = vrot.lane.b32.xlu0 %v3000_v44, %s2591_s23 }
 0x105   : > { %v652_v42 = vpop.permute.xlu1 %651 }
 0x106   : > { %729 = vst.msk [vmem:[#allocation3 + $0x98] sm:$0xff] %vm709_vm3, %v652_v42  ;;  %v658_v43 = vpop.permute.xlu0 %657 }
 0x107   : > { %1192 = vrot.lane.b32.xlu1 %v2966_v45, %s2591_s23  ;;  %732 = vst.msk [vmem:[#allocation3 + $0xb0] sm:$0xff] %vm709_vm3, %v658_v43 }
 0x108   : > { %1226 = vrot.lane.b32.xlu0 %v3008_v28, %s2591_s23 }
 0x109   : > { %v656_v13 = vpop.permute.xlu1 %655 }
 0x10a   : > { %731 = vst.msk [vmem:[#allocation3 + $0xa8] sm:$0xff] %vm709_vm3, %v656_v13  ;;  %v662_v56 = vpop.permute.xlu0 %661 }
 0x10b   : > { %1194 = vrot.lane.b32.xlu1 %v2974_v51, %s2591_s23  ;;  %734 = vst.msk [vmem:[#allocation3 + $0xc0] sm:$0xff] %vm709_vm3, %v662_v56 }
 0x10c   : > { %1418 = vrot.lane.b32.xlu0 %v2883_v6, %s2592_s24  ;;  %v1941_v6 = vld [vmem:[%s3754_s1 + $0x40] sm:$0xff] }
 0x10d   : > { %v660_v44 = vpop.permute.xlu1 %659  ;;  %2477 = vmatprep.subr.mxu0 %v1941_v6  ;;  %2543 = vmatprep.subr.mxu1 %v1941_v6 }
 0x10e   : > { %733 = vst.msk [vmem:[#allocation3 + $0xb8] sm:$0xff] %vm709_vm3, %v660_v44  ;;  %v666_v45 = vpop.permute.xlu0 %665  ;;  %2478 = vmatpush3.msra.mxu0 %v1941_v6  ;;  %2552 = vmatpush3.msra.mxu1 %v1941_v6  ;;  %v1535_v44 = vld [vmem:[#allocation2 + $0x121] sm:$0xff] }
 0x10f   : > { %1386 = vrot.lane.b32.xlu1 %v2812_v50, %s2592_s24  ;;  %736 = vst.msk [vmem:[#allocation3 + $0xd0] sm:$0xff] %vm709_vm3, %v666_v45  ;;  %v1519_v45 = vld [vmem:[#allocation2 + $0x61] sm:$0xff] }
 0x110   : > { %1420 = vrot.lane.b32.xlu0 %v2885_v7, %s2592_s24  ;;  %v1940_v7 = vld [vmem:[%s3754_s1 + $0x38] sm:$0xff] }
 0x111   : > { %v664_v28 = vpop.permute.xlu1 %663  ;;  %2479 = vmatprep.subr.mxu0 %v1940_v7  ;;  %2544 = vmatprep.subr.mxu1 %v1940_v7 }
 0x112   : > { %735 = vst.msk [vmem:[#allocation3 + $0xc8] sm:$0xff] %vm709_vm3, %v664_v28  ;;  %v670_v51 = vpop.permute.xlu0 %669  ;;  %2480 = vmatpush3.msra.mxu0 %v1940_v7  ;;  %2553 = vmatpush3.msra.mxu1 %v1940_v7 }
 0x113   : > { %1388 = vrot.lane.b32.xlu1 %v2818_v52, %s2592_s24  ;;  %738 = vst.msk [vmem:[#allocation3 + $0xe0] sm:$0xff] %vm709_vm3, %v670_v51  ;;  %2481 = vmatprep.subr.mxu0 %v1939_v4 }
 0x114   : > { %1611 = vrot.lane.b32.xlu0 %v2899_v10, %s2593_s27  ;;  %2482 = vmatpush3.msra.mxu0 %v1939_v4 }
 0x115   : > { %v668_v50 = vpop.permute.xlu1 %667  ;;  %2545 = vmatprep.subr.mxu1 %v1939_v4 }
 0x116   : > { %737 = vst.msk [vmem:[#allocation3 + $0xd8] sm:$0xff] %vm709_vm3, %v668_v50  ;;  %v674_v52 = vpop.permute.xlu0 %673  ;;  %2554 = vmatpush3.msra.mxu1 %v1939_v4  ;;  %v1536_v50 = vld [vmem:[#allocation2 + $0x129] sm:$0xff] }
 0x117   : > { %1579 = vrot.lane.b32.xlu1 %v2742_v26, %s2593_s27  ;;  %740 = vst.msk [vmem:[#allocation3 + $0xf0] sm:$0xff] %vm709_vm3, %v674_v52  ;;  %v1938_v26 = vld [vmem:[%s3754_s1 + $0x28] sm:$0xff] }
 0x118   : > { %1581 = vrot.lane.b32.xlu0 %v2761_v31, %s2593_s27  ;;  %2483 = vmatprep.subr.mxu0 %v1938_v26 }
 0x119   : > { %v672_v3 = vpop.permute.xlu1 %671  ;;  %2484 = vmatpush3.msra.mxu0 %v1938_v26  ;;  %2546 = vmatprep.subr.mxu1 %v1938_v26 }
 0x11a   : > { %739 = vst.msk [vmem:[#allocation3 + $0xe8] sm:$0xff] %vm709_vm3, %v672_v3  ;;  %v807_v47 = vpop.permute.xlu0 %806  ;;  %2485 = vmatprep.subr.mxu0 %v1937_v5  ;;  %2555 = vmatpush3.msra.mxu1 %v1938_v26  ;;  %v3780_v3 = vld [vmem:[#allocation7_spill] sm:$0xff] }
 0x11b   : > { %1035 = vrot.lane.b32.xlu1 %v2899_v10, %s2590_s22  ;;  %903 = vst.msk [vmem:[#allocation3] sm:$0xff] %vm902_vm4, %v807_v47  ;;  %v1936_v10 = vld [vmem:[%s3754_s1 + $0x18] sm:$0xff]  ;;  %2486 = vmatpush3.msra.mxu0 %v1937_v5 }
 0x11c   : > { %1772 = vrot.lane.b32.xlu0 %v2971_v48, %s2594_s9  ;;  %2547 = vmatprep.subr.mxu1 %v1937_v5 }
 0x11d   : > { %v676_v31 = vpop.permute.xlu1 %675  ;;  %2487 = vmatprep.subr.mxu0 %v1936_v10  ;;  %2556 = vmatpush3.msra.mxu1 %v1937_v5 }
 0x11e   : > { %741 = vst.msk [vmem:[#allocation3 + $0xf8] sm:$0xff] %vm709_vm3, %v676_v31  ;;  %v811_v35 = vpop.permute.xlu0 %810  ;;  %2488 = vmatpush3.msra.mxu0 %v1936_v10  ;;  %2548 = vmatprep.subr.mxu1 %v1936_v10  ;;  %v1713_v31 = vld [vmem:[#allocation2 + $0x6a] sm:$0xff] }
 0x11f   : > { %1613 = vrot.lane.b32.xlu1 %v2926_v17, %s2593_s27  ;;  %905 = vst.msk [vmem:[#allocation3 + $0x10] sm:$0xff] %vm902_vm4, %v811_v35  ;;  %2489 = vmatprep.subr.mxu0 %v1935_v38  ;;  %v3781_v35 = vld [vmem:[#allocation9_spill] sm:$0xff] }
 0x120   : > { %1037 = vrot.lane.b32.xlu0 %v2926_v17, %s2590_s22  ;;  %2557 = vmatpush3.msra.mxu1 %v1936_v10  ;;  %v1933_v17 = vld [vmem:[%s3754_s1] sm:$0xff] }
 0x121   : > { %v809_v49 = vpop.permute.xlu1 %808  ;;  %2490 = vmatpush3.msra.mxu0 %v1935_v38  ;;  %2549 = vmatprep.subr.mxu1 %v1935_v38 }
 0x122   : > { %904 = vst.msk [vmem:[#allocation3 + $0x8] sm:$0xff] %vm902_vm4, %v809_v49  ;;  %v815_v37 = vpop.permute.xlu0 %814  ;;  %2491 = vmatprep.subr.mxu0 %v1934_v36  ;;  %2558 = vmatpush3.msra.mxu1 %v1935_v38 }
 0x123   : > { %1804 = vrot.lane.b32.xlu1 %v3005_v18, %s2594_s9  ;;  %907 = vst.msk [vmem:[#allocation3 + $0x20] sm:$0xff] %vm902_vm4, %v815_v37  ;;  %2492 = vmatpush3.msra.mxu0 %v1934_v36 }
 0x124   : > { %1228 = vrot.lane.b32.xlu0 %v3005_v18, %s2591_s23  ;;  %2550 = vmatprep.subr.mxu1 %v1934_v36 }
 0x125   : > { %v813_v22 = vpop.permute.xlu1 %812  ;;  %2493 = vmatprep.subr.mxu0 %v1933_v17  ;;  %2559 = vmatpush3.msra.mxu1 %v1934_v36 }
 0x126   : > { %906 = vst.msk [vmem:[#allocation3 + $0x18] sm:$0xff] %vm902_vm4, %v813_v22  ;;  %v819_v46 = vpop.permute.xlu0 %818  ;;  %2494 = vmatpush3.msra.mxu0 %v1933_v17  ;;  %2551 = vmatprep.subr.mxu1 %v1933_v17 }
 0x127   : > { %1196 = vrot.lane.b32.xlu1 %v2971_v48, %s2591_s23  ;;  %909 = vst.msk [vmem:[#allocation3 + $0x30] sm:$0xff] %vm902_vm4, %v819_v46  ;;  %2560 = vmatpush3.msra.mxu1 %v1933_v17  ;;  %v1537_v46 = vld [vmem:[#allocation2 + $0x139] sm:$0xff] }
 0x128   : > { %1806 = vrot.lane.b32.xlu0 %v3016_v33, %s2594_s9 }
 0x129   : > { %v817_v29 = vpop.permute.xlu1 %816 }
 0x12a   : > { %908 = vst.msk [vmem:[#allocation3 + $0x28] sm:$0xff] %vm902_vm4, %v817_v29  ;;  %v823_v18 = vpop.permute.xlu0 %822  ;;  %v1521_v29 = vld [vmem:[#allocation2 + $0x79] sm:$0xff] }
 0x12b   : > { %1774 = vrot.lane.b32.xlu1 %v2982_v63, %s2594_s9  ;;  %911 = vst.msk [vmem:[#allocation3 + $0x40] sm:$0xff] %vm902_vm4, %v823_v18 }
 0x12c   : > { %1230 = vrot.lane.b32.xlu0 %v3016_v33, %s2591_s23 }
 0x12d   : > { %v821_v48 = vpop.permute.xlu1 %820 }
 0x12e   : > { %910 = vst.msk [vmem:[#allocation3 + $0x38] sm:$0xff] %vm902_vm4, %v821_v48  ;;  %v827_v34 = vpop.permute.xlu0 %826 }
 0x12f   : > { %1198 = vrot.lane.b32.xlu1 %v2982_v63, %s2591_s23  ;;  %913 = vst.msk [vmem:[#allocation3 + $0x50] sm:$0xff] %vm902_vm4, %v827_v34 }
 0x130   : > { %1422 = vrot.lane.b32.xlu0 %v2887_v8, %s2592_s24  ;;  %v1517_v8 = vld [vmem:[#allocation2 + $0x49] sm:$0xff] }
 0x131   : > { %v825_v23 = vpop.permute.xlu1 %824 }
 0x132   : > { %912 = vst.msk [vmem:[#allocation3 + $0x48] sm:$0xff] %vm902_vm4, %v825_v23  ;;  %v831_v61 = vpop.permute.xlu0 %830  ;;  %v1538_v23 = vld [vmem:[#allocation2 + $0x141] sm:$0xff] }
 0x133   : > { %1390 = vrot.lane.b32.xlu1 %v2823_v54, %s2592_s24  ;;  %915 = vst.msk [vmem:[#allocation3 + $0x60] sm:$0xff] %vm902_vm4, %v831_v61  ;;  %v1518_v54 = vld [vmem:[#allocation2 + $0x51] sm:$0xff] }
 0x134   : > { %1424 = vrot.lane.b32.xlu0 %v2897_v9, %s2592_s24 }
 0x135   : > { %v829_v33 = vpop.permute.xlu1 %828 }
 0x136   : > { %914 = vst.msk [vmem:[#allocation3 + $0x58] sm:$0xff] %vm902_vm4, %v829_v33  ;;  %v835_v63 = vpop.permute.xlu0 %834 }
 0x137   : > { %1392 = vrot.lane.b32.xlu1 %v2825_v55, %s2592_s24  ;;  %917 = vst.msk [vmem:[#allocation3 + $0x70] sm:$0xff] %vm902_vm4, %v835_v63  ;;  %v1730_v63 = vld [vmem:[#allocation2 + $0x13a] sm:$0xff] }
 0x138   : > { %1615 = vrot.lane.b32.xlu0 %v2916_v14, %s2593_s27 }
 0x139   : > { %v833_v21 = vpop.permute.xlu1 %832 }
 0x13a   : > { %916 = vst.msk [vmem:[#allocation3 + $0x68] sm:$0xff] %vm902_vm4, %v833_v21  ;;  %v839_v0 = vpop.permute.xlu0 %838 }
 0x13b   : > { %1583 = vrot.lane.b32.xlu1 %v1517_v8, %s2593_s27  ;;  %919 = vst.msk [vmem:[#allocation3 + $0x80] sm:$0xff] %vm902_vm4, %v839_v0  ;;  %v1731_v0 = vld [vmem:[#allocation2 + $0x142] sm:$0xff] }
 0x13c   : > { %1585 = vrot.lane.b32.xlu0 %v1518_v54, %s2593_s27 }
 0x13d   : > { %v837_v9 = vpop.permute.xlu1 %836 }
 0x13e   : > { %918 = vst.msk [vmem:[#allocation3 + $0x78] sm:$0xff] %vm902_vm4, %v837_v9  ;;  %v843_v55 = vpop.permute.xlu0 %842 }
 0x13f   : > { %1039 = vrot.lane.b32.xlu1 %v2916_v14, %s2590_s22  ;;  %921 = vst.msk [vmem:[#allocation3 + $0x90] sm:$0xff] %vm902_vm4, %v843_v55  ;;  %v3777_v14 = vld [vmem:[#allocation6_spill] sm:$0xff] }
 0x140   : > { %1776 = vrot.lane.b32.xlu0 %v2978_v53, %s2594_s9  ;;  %v1715_v55 = vld [vmem:[#allocation2 + $0x82] sm:$0xff] }
 0x141   : > { %v841_v24 = vpop.permute.xlu1 %840 }
 0x142   : > { %920 = vst.msk [vmem:[#allocation3 + $0x88] sm:$0xff] %vm902_vm4, %v841_v24  ;;  %v847_v62 = vpop.permute.xlu0 %846 }
 0x143   : > { %1617 = vrot.lane.b32.xlu1 %v3776_v25, %s2593_s27  ;;  %923 = vst.msk [vmem:[#allocation3 + $0xa0] sm:$0xff] %vm902_vm4, %v847_v62 }
 0x144   : > { %1041 = vrot.lane.b32.xlu0 %v3776_v25, %s2590_s22 }
 0x145   : > { %v845_v2 = vpop.permute.xlu1 %844 }
 0x146   : > { %922 = vst.msk [vmem:[#allocation3 + $0x98] sm:$0xff] %vm902_vm4, %v845_v2  ;;  %v851_v27 = vpop.permute.xlu0 %850 }
 0x147   : > { %1808 = vrot.lane.b32.xlu1 %v3777_v14, %s2594_s9  ;;  %925 = vst.msk [vmem:[#allocation3 + $0xb0] sm:$0xff] %vm902_vm4, %v851_v27  ;;  %v1330_v27 = vld [vmem:[#allocation2 + $0x90] sm:$0xff] }
 0x148   : > { %1232 = vrot.lane.b32.xlu0 %v3777_v14, %s2591_s23 }
 0x149   : > { %v849_v30 = vpop.permute.xlu1 %848 }
 0x14a   : > { %924 = vst.msk [vmem:[#allocation3 + $0xa8] sm:$0xff] %vm902_vm4, %v849_v30  ;;  %v855_v1 = vpop.permute.xlu0 %854 }
 0x14b   : > { %1200 = vrot.lane.b32.xlu1 %v2978_v53, %s2591_s23  ;;  %927 = vst.msk [vmem:[#allocation3 + $0xc0] sm:$0xff] %vm902_vm4, %v855_v1 }
 0x14c   : > { %1810 = vrot.lane.b32.xlu0 %v3778_v39, %s2594_s9 }
 0x14d   : > { %v853_v32 = vpop.permute.xlu1 %852 }
 0x14e   : > { %926 = vst.msk [vmem:[#allocation3 + $0xb8] sm:$0xff] %vm902_vm4, %v853_v32  ;;  %v859_v41 = vpop.permute.xlu0 %858 }
 0x14f   : > { %1778 = vrot.lane.b32.xlu1 %v3779_v40, %s2594_s9  ;;  %929 = vst.msk [vmem:[#allocation3 + $0xd0] sm:$0xff] %vm902_vm4, %v859_v41  ;;  %v1539_v41 = vld [vmem:[#allocation2 + $0x151] sm:$0xff] }
 0x150   : > { %1234 = vrot.lane.b32.xlu0 %v3778_v39, %s2591_s23  ;;  %v1331_v39 = vld [vmem:[#allocation2 + $0x98] sm:$0xff] }
 0x151   : > { %v857_v42 = vpop.permute.xlu1 %856 }
 0x152   : > { %928 = vst.msk [vmem:[#allocation3 + $0xc8] sm:$0xff] %vm902_vm4, %v857_v42  ;;  %v863_v53 = vpop.permute.xlu0 %862 }
 0x153   : > { %1202 = vrot.lane.b32.xlu1 %v3779_v40, %s2591_s23  ;;  %931 = vst.msk [vmem:[#allocation3 + $0xe0] sm:$0xff] %vm902_vm4, %v863_v53  ;;  %v1523_v53 = vld [vmem:[#allocation2 + $0x91] sm:$0xff] }
 0x154   : > { %1426 = vrot.lane.b32.xlu0 %v2903_v11, %s2592_s24 }
 0x155   : > { %v861_v43 = vpop.permute.xlu1 %860 }
 0x156   : > { %930 = vst.msk [vmem:[#allocation3 + $0xd8] sm:$0xff] %vm902_vm4, %v861_v43  ;;  %v867_v13 = vpop.permute.xlu0 %866 }
 0x157   : > { %1394 = vrot.lane.b32.xlu1 %v2833_v57, %s2592_s24  ;;  %933 = vst.msk [vmem:[#allocation3 + $0xf0] sm:$0xff] %vm902_vm4, %v867_v13  ;;  %v1520_v57 = vld [vmem:[#allocation2 + $0x69] sm:$0xff] }
 0x158   : > { %1428 = vrot.lane.b32.xlu0 %v2908_v12, %s2592_s24 }
 0x159   : > { %v865_v56 = vpop.permute.xlu1 %864 }
 0x15a   : > { %932 = vst.msk [vmem:[#allocation3 + $0xe8] sm:$0xff] %vm902_vm4, %v865_v56  ;;  %v1000_v11 = vpop.permute.xlu0 %999 }
 0x15b   : > { %1396 = vrot.lane.b32.xlu1 %v2835_v58, %s2592_s24  ;;  %1096 = vst.msk [vmem:[#allocation3] sm:$0xff] %vm1095_vm5, %v1000_v11  ;;  %v1712_v58 = vld [vmem:[#allocation2 + $0x62] sm:$0xff]  ;;  %v1716_v11 = vld [vmem:[#allocation2 + $0x92] sm:$0xff] }
 0x15c   : > { %1619 = vrot.lane.b32.xlu0 %v1535_v44, %s2593_s27 }
 0x15d   : > { %v869_v28 = vpop.permute.xlu1 %868 }
 0x15e   : > { %934 = vst.msk [vmem:[#allocation3 + $0xf8] sm:$0xff] %vm902_vm4, %v869_v28  ;;  %v1004_v12 = vpop.permute.xlu0 %1003  ;;  %v1540_v28 = vld [vmem:[#allocation2 + $0x159] sm:$0xff] }
 0x15f   : > { %1587 = vrot.lane.b32.xlu1 %v1519_v45, %s2593_s27  ;;  %1098 = vst.msk [vmem:[#allocation3 + $0x10] sm:$0xff] %vm1095_vm5, %v1004_v12 }
 0x160   : > { %1589 = vrot.lane.b32.xlu0 %v1520_v57, %s2593_s27 }
 0x161   : > { %v1002_v51 = vpop.permute.xlu1 %1001 }
 0x162   : > { %1097 = vst.msk [vmem:[#allocation3 + $0x8] sm:$0xff] %vm1095_vm5, %v1002_v51  ;;  %v1008_v6 = vpop.permute.xlu0 %1007  ;;  %v1732_v51 = vld [vmem:[#allocation2 + $0x152] sm:$0xff] }
 0x163   : > { %1043 = vrot.lane.b32.xlu1 %v1535_v44, %s2590_s22  ;;  %1100 = vst.msk [vmem:[#allocation3 + $0x20] sm:$0xff] %vm1095_vm5, %v1008_v6 }
 0x164   : > { %1780 = vrot.lane.b32.xlu0 %v1712_v58, %s2594_s9 }
 0x165   : > { %v1006_v7 = vpop.permute.xlu1 %1005 }
 0x166   : > { %1099 = vst.msk [vmem:[#allocation3 + $0x18] sm:$0xff] %vm1095_vm5, %v1006_v7  ;;  %v1012_v52 = vpop.permute.xlu0 %1011  ;;  %v1717_v7 = vld [vmem:[#allocation2 + $0x9a] sm:$0xff] }
 0x167   : > { %1621 = vrot.lane.b32.xlu1 %v1536_v50, %s2593_s27  ;;  %1102 = vst.msk [vmem:[#allocation3 + $0x30] sm:$0xff] %vm1095_vm5, %v1012_v52 }
 0x168   : > { %1045 = vrot.lane.b32.xlu0 %v1536_v50, %s2590_s22 }
 0x169   : > { %v1010_v4 = vpop.permute.xlu1 %1009 }
 0x16a   : > { %1101 = vst.msk [vmem:[#allocation3 + $0x28] sm:$0xff] %vm1095_vm5, %v1010_v4  ;;  %v1016_v26 = vpop.permute.xlu0 %1015 }
 0x16b   : > { %1812 = vrot.lane.b32.xlu1 %v3780_v3, %s2594_s9  ;;  %1104 = vst.msk [vmem:[#allocation3 + $0x40] sm:$0xff] %vm1095_vm5, %v1016_v26 }
 0x16c   : > { %1236 = vrot.lane.b32.xlu0 %v3780_v3, %s2591_s23 }
 0x16d   : > { %v1014_v47 = vpop.permute.xlu1 %1013 }
 0x16e   : > { %1103 = vst.msk [vmem:[#allocation3 + $0x38] sm:$0xff] %vm1095_vm5, %v1014_v47  ;;  %v1020_v5 = vpop.permute.xlu0 %1019  ;;  %v1733_v47 = vld [vmem:[#allocation2 + $0x15a] sm:$0xff] }
 0x16f   : > { %1204 = vrot.lane.b32.xlu1 %v1712_v58, %s2591_s23  ;;  %1106 = vst.msk [vmem:[#allocation3 + $0x50] sm:$0xff] %vm1095_vm5, %v1020_v5 }
 0x170   : > { %1814 = vrot.lane.b32.xlu0 %v3781_v35, %s2594_s9 }
 0x171   : > { %v1018_v10 = vpop.permute.xlu1 %1017 }
 0x172   : > { %1105 = vst.msk [vmem:[#allocation3 + $0x48] sm:$0xff] %vm1095_vm5, %v1018_v10  ;;  %v1034_v38 = vpop.permute.xlu0 %1033 }
 0x173   : > { %1782 = vrot.lane.b32.xlu1 %v1713_v31, %s2594_s9  ;;  %1113 = vst.msk [vmem:[#allocation3 + $0x88] sm:$0xff] %vm1095_vm5, %v1034_v38 }
 0x174   : > { %1238 = vrot.lane.b32.xlu0 %v3781_v35, %s2591_s23 }
 0x175   : > { %v1032_v49 = vpop.permute.xlu1 %1031 }
 0x176   : > { %1112 = vst.msk [vmem:[#allocation3 + $0x80] sm:$0xff] %vm1095_vm5, %v1032_v49  ;;  %v1225_v37 = vpop.permute.xlu0 %1224  ;;  %v1333_v49 = vld [vmem:[#allocation2 + $0xb0] sm:$0xff] }
 0x177   : > { %1206 = vrot.lane.b32.xlu1 %v1713_v31, %s2591_s23  ;;  %1305 = vst.msk [vmem:[#allocation3 + $0x80] sm:$0xff] %vm1288_vm6, %v1225_v37  ;;  %v1332_v31 = vld [vmem:[#allocation2 + $0xa8] sm:$0xff] }
 0x178   : > { %1430 = vrot.lane.b32.xlu0 %v2918_v15, %s2592_s24 }
 0x179   : > { %v1193_v36 = vpop.permute.xlu1 %1192 }
 0x17a   : > { %1289 = vst.msk [vmem:[#allocation3] sm:$0xff] %vm1288_vm6, %v1193_v36  ;;  %v1227_v22 = vpop.permute.xlu0 %1226  ;;  %v1348_v36 = vld [vmem:[#allocation2 + $0x168] sm:$0xff] }
 0x17b   : > { %1398 = vrot.lane.b32.xlu1 %v2837_v59, %s2592_s24  ;;  %1306 = vst.msk [vmem:[#allocation3 + $0x88] sm:$0xff] %vm1288_vm6, %v1227_v22  ;;  %v1522_v59 = vld [vmem:[#allocation2 + $0x81] sm:$0xff] }
 0x17c   : > { %1432 = vrot.lane.b32.xlu0 %v2924_v16, %s2592_s24 }
 0x17d   : > { %v1195_v17 = vpop.permute.xlu1 %1194 }
 0x17e   : > { %1290 = vst.msk [vmem:[#allocation3 + $0x8] sm:$0xff] %vm1288_vm6, %v1195_v17  ;;  %v1419_v15 = vpop.permute.xlu0 %1418  ;;  %v1525_v17 = vld [vmem:[#allocation2 + $0xa9] sm:$0xff] }
 0x17f   : > { %1400 = vrot.lane.b32.xlu1 %v2846_v60, %s2592_s24  ;;  %1499 = vst.msk [vmem:[#allocation3 + $0x80] sm:$0xff] %vm1482_vm7, %v1419_v15  ;;  %v1714_v60 = vld [vmem:[#allocation2 + $0x7a] sm:$0xff] }
 0x180   : > { %1623 = vrot.lane.b32.xlu0 %v1537_v46, %s2593_s27 }
 0x181   : > { %v1387_v18 = vpop.permute.xlu1 %1386 }
 0x182   : > { %1483 = vst.msk [vmem:[#allocation3] sm:$0xff] %vm1482_vm7, %v1387_v18  ;;  %v1421_v16 = vpop.permute.xlu0 %1420 }
 0x183   : > { %1591 = vrot.lane.b32.xlu1 %v1521_v29, %s2593_s27  ;;  %1500 = vst.msk [vmem:[#allocation3 + $0x88] sm:$0xff] %vm1482_vm7, %v1421_v16  ;;  %v1349_v29 = vld [vmem:[#allocation2 + $0x170] sm:$0xff] }
 0x184   : > { %1593 = vrot.lane.b32.xlu0 %v1522_v59, %s2593_s27 }
 0x185   : > { %v1389_v48 = vpop.permute.xlu1 %1388 }
 0x186   : > { %1484 = vst.msk [vmem:[#allocation3 + $0x8] sm:$0xff] %vm1482_vm7, %v1389_v48  ;;  %v1612_v34 = vpop.permute.xlu0 %1611  ;;  %v1541_v48 = vld [vmem:[#allocation2 + $0x169] sm:$0xff] }
 0x187   : > { %1047 = vrot.lane.b32.xlu1 %v1537_v46, %s2590_s22  ;;  %1692 = vst.msk [vmem:[#allocation3 + $0x80] sm:$0xff] %vm1675_vm8, %v1612_v34  ;;  %v1526_v34 = vld [vmem:[#allocation2 + $0xb1] sm:$0xff] }
 0x188   : > { %1784 = vrot.lane.b32.xlu0 %v1714_v60, %s2594_s9 }
 0x189   : > { %v1580_v61 = vpop.permute.xlu1 %1579 }
 0x18a   : > { %1676 = vst.msk [vmem:[#allocation3] sm:$0xff] %vm1675_vm8, %v1580_v61  ;;  %v1582_v33 = vpop.permute.xlu0 %1581 }
 0x18b   : > { %1625 = vrot.lane.b32.xlu1 %v1538_v23, %s2593_s27  ;;  %1677 = vst.msk [vmem:[#allocation3 + $0x8] sm:$0xff] %vm1675_vm8, %v1582_v33  ;;  %v1718_v33 = vld [vmem:[#allocation2 + $0xaa] sm:$0xff] }
 0x18c   : > { %1049 = vrot.lane.b32.xlu0 %v1538_v23, %s2590_s22 }
 0x18d   : > { %v1036_v8 = vpop.permute.xlu1 %1035 }
 0x18e   : > { %1114 = vst.msk [vmem:[#allocation3 + $0x90] sm:$0xff] %vm1095_vm5, %v1036_v8  ;;  %v1773_v21 = vpop.permute.xlu0 %1772  ;;  %v1542_v8 = vld [vmem:[#allocation2 + $0x171] sm:$0xff] }
 0x18f   : > { %1816 = vrot.lane.b32.xlu1 %v1730_v63, %s2594_s9  ;;  %1869 = vst.msk [vmem:[#allocation3] sm:$0xff] %vm1868_vm9, %v1773_v21 }
 0x190   : > { %1240 = vrot.lane.b32.xlu0 %v1730_v63, %s2591_s23 }
 0x191   : > { %v1614_v54 = vpop.permute.xlu1 %1613 }
 0x192   : > { %1693 = vst.msk [vmem:[#allocation3 + $0x88] sm:$0xff] %vm1675_vm8, %v1614_v54  ;;  %v1038_v9 = vpop.permute.xlu0 %1037 }
 0x193   : > { %1208 = vrot.lane.b32.xlu1 %v1714_v60, %s2591_s23  ;;  %1115 = vst.msk [vmem:[#allocation3 + $0x98] sm:$0xff] %vm1095_vm5, %v1038_v9 }
 0x194   : > { %1818 = vrot.lane.b32.xlu0 %v1731_v0, %s2594_s9 }
 0x195   : > { %v1805_v24 = vpop.permute.xlu1 %1804 }
 0x196   : > { %1885 = vst.msk [vmem:[#allocation3 + $0x80] sm:$0xff] %vm1868_vm9, %v1805_v24  ;;  %v1229_v25 = vpop.permute.xlu0 %1228  ;;  %v1901_v62 = vld [vmem:[#allocation3] sm:$0xff] }
 0x197   : > { %1786 = vrot.lane.b32.xlu1 %v1715_v55, %s2594_s9  ;;  %1307 = vst.msk [vmem:[#allocation3 + $0x90] sm:$0xff] %vm1288_vm6, %v1229_v25  ;;  %2495 = vmatprep.mubr.msk.f32.mxu0 %vm1949_vm10, %v1901_v62  ;;  %v1719_v25 = vld [vmem:[#allocation2 + $0xb2] sm:$0xff] }
 0x198   : > { %1242 = vrot.lane.b32.xlu0 %v1731_v0, %s2591_s23  ;;  %v1734_v0 = vld [vmem:[#allocation2 + $0x16a] sm:$0xff] }
 0x199   : > { %v1197_v2 = vpop.permute.xlu1 %1196 }
 0x19a   : > { %1291 = vst.msk [vmem:[#allocation3 + $0x10] sm:$0xff] %vm1288_vm6, %v1197_v2  ;;  %v1807_v14 = vpop.permute.xlu0 %1806 }
 0x19b   : > { %1210 = vrot.lane.b32.xlu1 %v1715_v55, %s2591_s23  ;;  %1886 = vst.msk [vmem:[#allocation3 + $0x88] sm:$0xff] %vm1868_vm9, %v1807_v14 }
 0x19c   : > { %1434 = vrot.lane.b32.xlu0 %v2932_v19, %s2592_s24 }
 0x19d   : > { %v1775_v30 = vpop.permute.xlu1 %1774  ;;  %v1917_v1 = vld [vmem:[#allocation3 + $0x80] sm:$0xff] }
 0x19e   : > { %1870 = vst.msk [vmem:[#allocation3 + $0x8] sm:$0xff] %vm1868_vm9, %v1775_v30  ;;  %2519 = vmatprep.mubr.msk.f32.mxu1 %vm1949_vm10, %v1917_v1  ;;  %v1231_v32 = vpop.permute.xlu0 %1230  ;;  %v1735_v30 = vld [vmem:[#allocation2 + $0x172] sm:$0xff] }
 0x19f   : > { %1402 = vrot.lane.b32.xlu1 %v1330_v27, %s2592_s24  ;;  %1308 = vst.msk [vmem:[#allocation3 + $0x98] sm:$0xff] %vm1288_vm6, %v1231_v32 }
 0x1a0   : > { %1436 = vrot.lane.b32.xlu0 %v2938_v20, %s2592_s24  ;;  %v1524_v20 = vld [vmem:[#allocation2 + $0x99] sm:$0xff] }
 0x1a1   : > { %v1199_v40 = vpop.permute.xlu1 %1198 }
 0x1a2   : > { %1292 = vst.msk [vmem:[#allocation3 + $0x18] sm:$0xff] %vm1288_vm6, %v1199_v40  ;;  %v1423_v19 = vpop.permute.xlu0 %1422  ;;  %v1918_v42 = vld [vmem:[#allocation3 + $0x88] sm:$0xff] }
 0x1a3   : > { %1404 = vrot.lane.b32.xlu1 %v1331_v39, %s2592_s24  ;;  %1501 = vst.msk [vmem:[#allocation3 + $0x90] sm:$0xff] %vm1482_vm7, %v1423_v19  ;;  %2520 = vmatmul.mubr.msk.f32.vlgmr.msra.gmra.mxu1 %vm1949_vm10, %v1918_v42  ;;  %v1334_v39 = vld [vmem:[#allocation2 + $0xc0] sm:$0xff]  ;;  %v1335_v19 = vld [vmem:[#allocation2 + $0xc8] sm:$0xff] }
 0x1a4   : > { %1627 = vrot.lane.b32.xlu0 %v1539_v41, %s2593_s27 }
 0x1a5   : > { %v1391_v43 = vpop.permute.xlu1 %1390  ;;  %v1902_v13 = vld [vmem:[#allocation3 + $0x8] sm:$0xff] }
 0x1a6   : > { %1485 = vst.msk [vmem:[#allocation3 + $0x10] sm:$0xff] %vm1482_vm7, %v1391_v43  ;;  %2496 = vmatmul.mubr.msk.f32.vlgmr.msra.gmra.mxu0 %vm1949_vm10, %v1902_v13  ;;  %v1425_v56 = vpop.permute.xlu0 %1424  ;;  %v1350_v43 = vld [vmem:[#allocation2 + $0x180] sm:$0xff] }
 0x1a7   : > { %1595 = vrot.lane.b32.xlu1 %v1523_v53, %s2593_s27  ;;  %1502 = vst.msk [vmem:[#allocation3 + $0x98] sm:$0xff] %vm1482_vm7, %v1425_v56  ;;  %v1527_v56 = vld [vmem:[#allocation2 + $0xc1] sm:$0xff] }
 0x1a8   : > { %1597 = vrot.lane.b32.xlu0 %v1524_v20, %s2593_s27 }
 0x1a9   : > { %v1393_v44 = vpop.permute.xlu1 %1392 }
 0x1aa   : > { %1486 = vst.msk [vmem:[#allocation3 + $0x18] sm:$0xff] %vm1482_vm7, %v1393_v44  ;;  %v1616_v45 = vpop.permute.xlu0 %1615 }
 0x1ab   : > { %1051 = vrot.lane.b32.xlu1 %v1539_v41, %s2590_s22  ;;  %1694 = vst.msk [vmem:[#allocation3 + $0x90] sm:$0xff] %vm1675_vm8, %v1616_v45 }
 0x1ac   : > { %1788 = vrot.lane.b32.xlu0 %v1716_v11, %s2594_s9 }
 0x1ad   : > { %v1584_v57 = vpop.permute.xlu1 %1583 }
 0x1ae   : > { %1678 = vst.msk [vmem:[#allocation3 + $0x10] sm:$0xff] %vm1675_vm8, %v1584_v57  ;;  %v1586_v12 = vpop.permute.xlu0 %1585  ;;  %v1543_v57 = vld [vmem:[#allocation2 + $0x181] sm:$0xff] }
 0x1af   : > { %1629 = vrot.lane.b32.xlu1 %v1540_v28, %s2593_s27  ;;  %1679 = vst.msk [vmem:[#allocation3 + $0x18] sm:$0xff] %vm1675_vm8, %v1586_v12 }
 0x1b0   : > { %1021 = vrot.lane.b32.xlu0 %v1524_v20, %s2590_s22 }
 0x1b1   : > { %v1040_v58 = vpop.permute.xlu1 %1039 }
 0x1b2   : > { %1116 = vst.msk [vmem:[#allocation3 + $0xa0] sm:$0xff] %vm1095_vm5, %v1040_v58  ;;  %v1777_v6 = vpop.permute.xlu0 %1776 }
 0x1b3   : > { %1820 = vrot.lane.b32.xlu1 %v1732_v51, %s2594_s9  ;;  %1871 = vst.msk [vmem:[#allocation3 + $0x10] sm:$0xff] %vm1868_vm9, %v1777_v6 }
 0x1b4   : > { %1212 = vrot.lane.b32.xlu0 %v1716_v11, %s2591_s23  ;;  %v1351_v11 = vld [vmem:[#allocation2 + $0x188] sm:$0xff] }
 0x1b5   : > { %v1618_v50 = vpop.permute.xlu1 %1617 }
 0x1b6   : > { %1695 = vst.msk [vmem:[#allocation3 + $0x98] sm:$0xff] %vm1675_vm8, %v1618_v50  ;;  %v1042_v52 = vpop.permute.xlu0 %1041  ;;  %v1720_v50 = vld [vmem:[#allocation2 + $0xc2] sm:$0xff] }
 0x1b7   : > { %1053 = vrot.lane.b32.xlu1 %v1540_v28, %s2590_s22  ;;  %1117 = vst.msk [vmem:[#allocation3 + $0xa8] sm:$0xff] %vm1095_vm5, %v1042_v52  ;;  %v1544_v52 = vld [vmem:[#allocation2 + $0x189] sm:$0xff] }
 0x1b8   : > { %1790 = vrot.lane.b32.xlu0 %v1717_v7, %s2594_s9 }
 0x1b9   : > { %v1809_v4 = vpop.permute.xlu1 %1808 }
 0x1ba   : > { %1887 = vst.msk [vmem:[#allocation3 + $0x90] sm:$0xff] %vm1868_vm9, %v1809_v4  ;;  %v1233_v3 = vpop.permute.xlu0 %1232  ;;  %v1903_v26 = vld [vmem:[#allocation3 + $0x10] sm:$0xff] }
 0x1bb   : > { %1244 = vrot.lane.b32.xlu1 %v1732_v51, %s2591_s23  ;;  %1309 = vst.msk [vmem:[#allocation3 + $0xa0] sm:$0xff] %vm1288_vm6, %v1233_v3  ;;  %2498 = vmatprep.mubr.msk.f32.mxu0 %vm1949_vm10, %v1903_v26  ;;  %v1528_v51 = vld [vmem:[#allocation2 + $0xc9] sm:$0xff] }
 0x1bc   : > { %1214 = vrot.lane.b32.xlu0 %v1717_v7, %s2591_s23  ;;  %v1736_v26 = vld [vmem:[#allocation2 + $0x182] sm:$0xff] }
 0x1bd   : > { %v1201_v5 = vpop.permute.xlu1 %1200 }
 0x1be   : > { %1293 = vst.msk [vmem:[#allocation3 + $0x20] sm:$0xff] %vm1288_vm6, %v1201_v5  ;;  %v1811_v10 = vpop.permute.xlu0 %1810 }
 0x1bf   : > { %1822 = vrot.lane.b32.xlu1 %v1733_v47, %s2594_s9  ;;  %1888 = vst.msk [vmem:[#allocation3 + $0x98] sm:$0xff] %vm1868_vm9, %v1811_v10 }
 0x1c0   : > { %1406 = vrot.lane.b32.xlu0 %v1332_v31, %s2592_s24 }
 0x1c1   : > { %v1779_v35 = vpop.permute.xlu1 %1778  ;;  %v1919_v38 = vld [vmem:[#allocation3 + $0x90] sm:$0xff] }
 0x1c2   : > { %1872 = vst.msk [vmem:[#allocation3 + $0x18] sm:$0xff] %vm1868_vm9, %v1779_v35  ;;  %2522 = vmatprep.mubr.msk.f32.mxu1 %vm1949_vm10, %v1919_v38  ;;  %v1235_v37 = vpop.permute.xlu0 %1234  ;;  %v1721_v35 = vld [vmem:[#allocation2 + $0xca] sm:$0xff] }
 0x1c3   : > { %1246 = vrot.lane.b32.xlu1 %v1733_v47, %s2591_s23  ;;  %1310 = vst.msk [vmem:[#allocation3 + $0xa8] sm:$0xff] %vm1288_vm6, %v1235_v37 }
 0x1c4   : > { %1408 = vrot.lane.b32.xlu0 %v1333_v49, %s2592_s24 }
 0x1c5   : > { %v1203_v22 = vpop.permute.xlu1 %1202 }
 0x1c6   : > { %1294 = vst.msk [vmem:[#allocation3 + $0x28] sm:$0xff] %vm1288_vm6, %v1203_v22  ;;  %v1427_v46 = vpop.permute.xlu0 %1426  ;;  %v1920_v15 = vld [vmem:[#allocation3 + $0x98] sm:$0xff] }
 0x1c7   : > { %1438 = vrot.lane.b32.xlu1 %v1348_v36, %s2592_s24  ;;  %1503 = vst.msk [vmem:[#allocation3 + $0xa0] sm:$0xff] %vm1482_vm7, %v1427_v46  ;;  %2523 = vmatmul.mubr.msk.f32.gmra.mxu1 %vm1949_vm10, %v1920_v15  ;;  %v1737_v22 = vld [vmem:[#allocation2 + $0x18a] sm:$0xff]  ;;  %v1336_v46 = vld [vmem:[#allocation2 + $0xd8] sm:$0xff] }
 0x1c8   : > { %1599 = vrot.lane.b32.xlu0 %v1525_v17, %s2593_s27 }
 0x1c9   : > { %v1395_v18 = vpop.permute.xlu1 %1394  ;;  %v1904_v59 = vld [vmem:[#allocation3 + $0x18] sm:$0xff] }
 0x1ca   : > { %1487 = vst.msk [vmem:[#allocation3 + $0x20] sm:$0xff] %vm1482_vm7, %v1395_v18  ;;  %2499 = vmatmul.mubr.msk.f32.gmra.mxu0 %vm1949_vm10, %v1904_v59  ;;  %v1429_v16 = vpop.permute.xlu0 %1428 }
 0x1cb   : > { %1440 = vrot.lane.b32.xlu1 %v1349_v29, %s2592_s24  ;;  %1504 = vst.msk [vmem:[#allocation3 + $0xa8] sm:$0xff] %vm1482_vm7, %v1429_v16  ;;  %v1337_v16 = vld [vmem:[#allocation2 + $0xe0] sm:$0xff] }
 0x1cc   : > { %1023 = vrot.lane.b32.xlu0 %v1525_v17, %s2590_s22 }
 0x1cd   : > { %v1397_v60 = vpop.permute.xlu1 %1396 }
 0x1ce   : > { %1488 = vst.msk [vmem:[#allocation3 + $0x28] sm:$0xff] %vm1482_vm7, %v1397_v60  ;;  %v1620_v23 = vpop.permute.xlu0 %1619  ;;  %v1352_v60 = vld [vmem:[#allocation2 + $0x198] sm:$0xff] }
 0x1cf   : > { %1631 = vrot.lane.b32.xlu1 %v1541_v48, %s2593_s27  ;;  %1696 = vst.msk [vmem:[#allocation3 + $0xa0] sm:$0xff] %vm1675_vm8, %v1620_v23  ;;  %v1529_v23 = vld [vmem:[#allocation2 + $0xd9] sm:$0xff] }
 0x1d0   : > { %1601 = vrot.lane.b32.xlu0 %v1526_v34, %s2593_s27 }
 0x1d1   : > { %v1588_v61 = vpop.permute.xlu1 %1587 }
 0x1d2   : > { %1680 = vst.msk [vmem:[#allocation3 + $0x20] sm:$0xff] %vm1675_vm8, %v1588_v61  ;;  %v1590_v63 = vpop.permute.xlu0 %1589 }
 0x1d3   : > { %1055 = vrot.lane.b32.xlu1 %v1541_v48, %s2590_s22  ;;  %1681 = vst.msk [vmem:[#allocation3 + $0x28] sm:$0xff] %vm1675_vm8, %v1590_v63 }
 0x1d4   : > { %1792 = vrot.lane.b32.xlu0 %v1718_v33, %s2594_s9 }
 0x1d5   : > { %v1044_v21 = vpop.permute.xlu1 %1043 }
 0x1d6   : > { %1118 = vst.msk [vmem:[#allocation3 + $0xb0] sm:$0xff] %vm1095_vm5, %v1044_v21  ;;  %v1781_v54 = vpop.permute.xlu0 %1780 }
 0x1d7   : > { %1633 = vrot.lane.b32.xlu1 %v1542_v8, %s2593_s27  ;;  %1873 = vst.msk [vmem:[#allocation3 + $0x20] sm:$0xff] %vm1868_vm9, %v1781_v54  ;;  %v1545_v54 = vld [vmem:[#allocation2 + $0x199] sm:$0xff] }
 0x1d8   : > { %1025 = vrot.lane.b32.xlu0 %v1526_v34, %s2590_s22 }
 0x1d9   : > { %v1622_v9 = vpop.permute.xlu1 %1621 }
 0x1da   : > { %1697 = vst.msk [vmem:[#allocation3 + $0xa8] sm:$0xff] %vm1675_vm8, %v1622_v9  ;;  %v1046_v55 = vpop.permute.xlu0 %1045  ;;  %v1722_v9 = vld [vmem:[#allocation2 + $0xda] sm:$0xff] }
 0x1db   : > { %1824 = vrot.lane.b32.xlu1 %v1734_v0, %s2594_s9  ;;  %1119 = vst.msk [vmem:[#allocation3 + $0xb8] sm:$0xff] %vm1095_vm5, %v1046_v55 }
 0x1dc   : > { %1216 = vrot.lane.b32.xlu0 %v1718_v33, %s2591_s23  ;;  %v1353_v33 = vld [vmem:[#allocation2 + $0x1a0] sm:$0xff] }
 0x1dd   : > { %v1813_v24 = vpop.permute.xlu1 %1812 }
 0x1de   : > { %1889 = vst.msk [vmem:[#allocation3 + $0xa0] sm:$0xff] %vm1868_vm9, %v1813_v24  ;;  %v1237_v62 = vpop.permute.xlu0 %1236  ;;  %v1905_v2 = vld [vmem:[#allocation3 + $0x20] sm:$0xff]  ;;  %v1546_v24 = vld [vmem:[#allocation2 + $0x1a1] sm:$0xff] }
 0x1df   : > { %1057 = vrot.lane.b32.xlu1 %v1542_v8, %s2590_s22  ;;  %1311 = vst.msk [vmem:[#allocation3 + $0xb0] sm:$0xff] %vm1288_vm6, %v1237_v62  ;;  %2501 = vmatprep.mubr.msk.f32.mxu0 %vm1949_vm10, %v1905_v2  ;;  %v1530_v8 = vld [vmem:[#allocation2 + $0xe1] sm:$0xff] }
 0x1e0   : > { %1794 = vrot.lane.b32.xlu0 %v1719_v25, %s2594_s9  ;;  %v1723_v62 = vld [vmem:[#allocation2 + $0xe2] sm:$0xff] }
 0x1e1   : > { %v1205_v14 = vpop.permute.xlu1 %1204 }
 0x1e2   : > { %1295 = vst.msk [vmem:[#allocation3 + $0x30] sm:$0xff] %vm1288_vm6, %v1205_v14  ;;  %v1815_v27 = vpop.permute.xlu0 %1814  ;;  %v1738_v14 = vld [vmem:[#allocation2 + $0x19a] sm:$0xff] }
 0x1e3   : > { %1248 = vrot.lane.b32.xlu1 %v1734_v0, %s2591_s23  ;;  %1890 = vst.msk [vmem:[#allocation3 + $0xa8] sm:$0xff] %vm1868_vm9, %v1815_v27 }
 0x1e4   : > { %1218 = vrot.lane.b32.xlu0 %v1719_v25, %s2591_s23 }
 0x1e5   : > { %v1783_v1 = vpop.permute.xlu1 %1782  ;;  %v1921_v32 = vld [vmem:[#allocation3 + $0xa0] sm:$0xff] }
 0x1e6   : > { %1874 = vst.msk [vmem:[#allocation3 + $0x28] sm:$0xff] %vm1868_vm9, %v1783_v1  ;;  %2525 = vmatprep.mubr.msk.f32.mxu1 %vm1949_vm10, %v1921_v32  ;;  %v1239_v40 = vpop.permute.xlu0 %1238  ;;  %v1739_v32 = vld [vmem:[#allocation2 + $0x1a2] sm:$0xff] }
 0x1e7   : > { %1826 = vrot.lane.b32.xlu1 %v1735_v30, %s2594_s9  ;;  %1312 = vst.msk [vmem:[#allocation3 + $0xb8] sm:$0xff] %vm1288_vm6, %v1239_v40 }
 0x1e8   : > { %1410 = vrot.lane.b32.xlu0 %v1334_v39, %s2592_s24 }
 0x1e9   : > { %v1207_v41 = vpop.permute.xlu1 %1206 }
 0x1ea   : > { %1296 = vst.msk [vmem:[#allocation3 + $0x38] sm:$0xff] %vm1288_vm6, %v1207_v41  ;;  %v1431_v42 = vpop.permute.xlu0 %1430  ;;  %v1922_v53 = vld [vmem:[#allocation3 + $0xa8] sm:$0xff] }
 0x1eb   : > { %1250 = vrot.lane.b32.xlu1 %v1735_v30, %s2591_s23  ;;  %1505 = vst.msk [vmem:[#allocation3 + $0xb0] sm:$0xff] %vm1482_vm7, %v1431_v42  ;;  %2526 = vmatmul.mubr.msk.f32.gmra.mxu1 %vm1949_vm10, %v1922_v53 }
 0x1ec   : > { %1412 = vrot.lane.b32.xlu0 %v1335_v19, %s2592_s24 }
 0x1ed   : > { %v1399_v13 = vpop.permute.xlu1 %1398  ;;  %v1906_v20 = vld [vmem:[#allocation3 + $0x28] sm:$0xff] }
 0x1ee   : > { %1489 = vst.msk [vmem:[#allocation3 + $0x30] sm:$0xff] %vm1482_vm7, %v1399_v13  ;;  %2502 = vmatmul.mubr.msk.f32.gmra.mxu0 %vm1949_vm10, %v1906_v20  ;;  %v1433_v44 = vpop.permute.xlu0 %1432 }
 0x1ef   : > { %1442 = vrot.lane.b32.xlu1 %v1350_v43, %s2592_s24  ;;  %1506 = vst.msk [vmem:[#allocation3 + $0xb8] sm:$0xff] %vm1482_vm7, %v1433_v44 }
 0x1f0   : > { %1603 = vrot.lane.b32.xlu0 %v1527_v56, %s2593_s27 }
 0x1f1   : > { %v1401_v45 = vpop.permute.xlu1 %1400 }
 0x1f2   : > { %1490 = vst.msk [vmem:[#allocation3 + $0x38] sm:$0xff] %vm1482_vm7, %v1401_v45  ;;  %v1624_v28 = vpop.permute.xlu0 %1623 }
 0x1f3   : > { %1444 = vrot.lane.b32.xlu1 %v1351_v11, %s2592_s24  ;;  %1698 = vst.msk [vmem:[#allocation3 + $0xb0] sm:$0xff] %vm1675_vm8, %v1624_v28 }
 0x1f4   : > { %1027 = vrot.lane.b32.xlu0 %v1527_v56, %s2590_s22 }
 0x1f5   : > { %v1592_v12 = vpop.permute.xlu1 %1591 }
 0x1f6   : > { %1682 = vst.msk [vmem:[#allocation3 + $0x30] sm:$0xff] %vm1675_vm8, %v1592_v12  ;;  %v1594_v58 = vpop.permute.xlu0 %1593 }
 0x1f7   : > { %1635 = vrot.lane.b32.xlu1 %v1543_v57, %s2593_s27  ;;  %1683 = vst.msk [vmem:[#allocation3 + $0x38] sm:$0xff] %vm1675_vm8, %v1594_v58 }
 0x1f8   : > { %1605 = vrot.lane.b32.xlu0 %v1528_v51, %s2593_s27 }
 0x1f9   : > { %v1048_v6 = vpop.permute.xlu1 %1047 }
 0x1fa   : > { %1120 = vst.msk [vmem:[#allocation3 + $0xc0] sm:$0xff] %vm1095_vm5, %v1048_v6  ;;  %v1785_v7 = vpop.permute.xlu0 %1784 }
 0x1fb   : > { %1059 = vrot.lane.b32.xlu1 %v1543_v57, %s2590_s22  ;;  %1875 = vst.msk [vmem:[#allocation3 + $0x30] sm:$0xff] %vm1868_vm9, %v1785_v7 }
 0x1fc   : > { %1796 = vrot.lane.b32.xlu0 %v1720_v50, %s2594_s9 }
 0x1fd   : > { %v1626_v4 = vpop.permute.xlu1 %1625 }
 0x1fe   : > { %1699 = vst.msk [vmem:[#allocation3 + $0xb8] sm:$0xff] %vm1675_vm8, %v1626_v4  ;;  %v1050_v3 = vpop.permute.xlu0 %1049 }
 0x1ff   : > { %1637 = vrot.lane.b32.xlu1 %v1544_v52, %s2593_s27  ;;  %1121 = vst.msk [vmem:[#allocation3 + $0xc8] sm:$0xff] %vm1095_vm5, %v1050_v3 }
 0x200   : > { %1029 = vrot.lane.b32.xlu0 %v1528_v51, %s2590_s22 }
 0x201   : > { %v1817_v47 = vpop.permute.xlu1 %1816 }
 0x202   : > { %1891 = vst.msk [vmem:[#allocation3 + $0xb0] sm:$0xff] %vm1868_vm9, %v1817_v47  ;;  %v1241_v5 = vpop.permute.xlu0 %1240  ;;  %v1907_v31 = vld [vmem:[#allocation3 + $0x30] sm:$0xff] }
 0x203   : > { %1828 = vrot.lane.b32.xlu1 %v1736_v26, %s2594_s9  ;;  %1313 = vst.msk [vmem:[#allocation3 + $0xc0] sm:$0xff] %vm1288_vm6, %v1241_v5  ;;  %2504 = vmatprep.mubr.msk.f32.mxu0 %vm1949_vm10, %v1907_v31 }
 0x204   : > { %1220 = vrot.lane.b32.xlu0 %v1720_v50, %s2591_s23 }
 0x205   : > { %v1209_v10 = vpop.permute.xlu1 %1208 }
 0x206   : > { %1297 = vst.msk [vmem:[#allocation3 + $0x40] sm:$0xff] %vm1288_vm6, %v1209_v10  ;;  %v1819_v38 = vpop.permute.xlu0 %1818 }
 0x207   : > { %1061 = vrot.lane.b32.xlu1 %v1544_v52, %s2590_s22  ;;  %1892 = vst.msk [vmem:[#allocation3 + $0xb8] sm:$0xff] %vm1868_vm9, %v1819_v38 }
 0x208   : > { %1798 = vrot.lane.b32.xlu0 %v1721_v35, %s2594_s9 }
 0x209   : > { %v1787_v49 = vpop.permute.xlu1 %1786  ;;  %v1923_v37 = vld [vmem:[#allocation3 + $0xb0] sm:$0xff] }
 0x20a   : > { %1876 = vst.msk [vmem:[#allocation3 + $0x38] sm:$0xff] %vm1868_vm9, %v1787_v49  ;;  %2528 = vmatprep.mubr.msk.f32.mxu1 %vm1949_vm10, %v1923_v37  ;;  %v1243_v36 = vpop.permute.xlu0 %1242 }
 0x20b   : > { %1252 = vrot.lane.b32.xlu1 %v1736_v26, %s2591_s23  ;;  %1314 = vst.msk [vmem:[#allocation3 + $0xc8] sm:$0xff] %vm1288_vm6, %v1243_v36 }
 0x20c   : > { %1222 = vrot.lane.b32.xlu0 %v1721_v35, %s2591_s23 }
 0x20d   : > { %v1211_v17 = vpop.permute.xlu1 %1210 }
 0x20e   : > { %1298 = vst.msk [vmem:[#allocation3 + $0x48] sm:$0xff] %vm1288_vm6, %v1211_v17  ;;  %v1435_v15 = vpop.permute.xlu0 %1434  ;;  %v1924_v29 = vld [vmem:[#allocation3 + $0xb8] sm:$0xff] }
 0x20f   : > { %1830 = vrot.lane.b32.xlu1 %v1737_v22, %s2594_s9  ;;  %1507 = vst.msk [vmem:[#allocation3 + $0xc0] sm:$0xff] %vm1482_vm7, %v1435_v15  ;;  %2529 = vmatmul.mubr.msk.f32.gmra.mxu1 %vm1949_vm10, %v1924_v29  ;;  %v3608_v15 = vld [vmem:[%s3755_s2] ss:$0 sm:$0xff] }
 0x210   : > { %1414 = vrot.lane.b32.xlu0 %v1336_v46, %s2592_s24 }
 0x211   : > { %v1403_v18 = vpop.permute.xlu1 %1402  ;;  %v1908_v59 = vld [vmem:[#allocation3 + $0x38] sm:$0xff] }
 0x212   : > { %1491 = vst.msk [vmem:[#allocation3 + $0x40] sm:$0xff] %vm1482_vm7, %v1403_v18  ;;  %2505 = vmatmul.mubr.msk.f32.gmra.mxu0 %vm1949_vm10, %v1908_v59  ;;  %v1437_v48 = vpop.permute.xlu0 %1436 }
 0x213   : > { %1254 = vrot.lane.b32.xlu1 %v1737_v22, %s2591_s23  ;;  %1508 = vst.msk [vmem:[#allocation3 + $0xc8] sm:$0xff] %vm1482_vm7, %v1437_v48 }
 0x214   : > { %1416 = vrot.lane.b32.xlu0 %v1337_v16, %s2592_s24 }
 0x215   : > { %v1405_v34 = vpop.permute.xlu1 %1404 }
 0x216   : > { %1492 = vst.msk [vmem:[#allocation3 + $0x48] sm:$0xff] %vm1482_vm7, %v1405_v34  ;;  %v1628_v61 = vpop.permute.xlu0 %1627 }
 0x217   : > { %1446 = vrot.lane.b32.xlu1 %v1352_v60, %s2592_s24  ;;  %1700 = vst.msk [vmem:[#allocation3 + $0xc0] sm:$0xff] %vm1675_vm8, %v1628_v61 }
 0x218   : > { %1607 = vrot.lane.b32.xlu0 %v1529_v23, %s2593_s27 }
 0x219   : > { %v1596_v63 = vpop.permute.xlu1 %1595 }
 0x21a   : > { %1684 = vst.msk [vmem:[#allocation3 + $0x40] sm:$0xff] %vm1675_vm8, %v1596_v63  ;;  %v1598_v21 = vpop.permute.xlu0 %1597 }
 0x21b   : > { %1448 = vrot.lane.b32.xlu1 %v1353_v33, %s2592_s24  ;;  %1685 = vst.msk [vmem:[#allocation3 + $0x48] sm:$0xff] %vm1675_vm8, %v1598_v21 }
 0x21c   : > { %1609 = vrot.lane.b32.xlu0 %v1530_v8, %s2593_s27 }
 0x21d   : > { %v1052_v0 = vpop.permute.xlu1 %1051 }
 0x21e   : > { %1122 = vst.msk [vmem:[#allocation3 + $0xd0] sm:$0xff] %vm1095_vm5, %v1052_v0  ;;  %v1789_v55 = vpop.permute.xlu0 %1788 }
 0x21f   : > { %1639 = vrot.lane.b32.xlu1 %v1545_v54, %s2593_s27  ;;  %1877 = vst.msk [vmem:[#allocation3 + $0x40] sm:$0xff] %vm1868_vm9, %v1789_v55 }
 0x220   : > { %1800 = vrot.lane.b32.xlu0 %v1722_v9, %s2594_s9 }
 0x221   : > { %v1630_v25 = vpop.permute.xlu1 %1629 }
 0x222   : > { %1701 = vst.msk [vmem:[#allocation3 + $0xc8] sm:$0xff] %vm1675_vm8, %v1630_v25  ;;  %v1022_v2 = vpop.permute.xlu0 %1021 }
 0x223   : > { %1641 = vrot.lane.b32.xlu1 %v1546_v24, %s2593_s27  ;;  %1107 = vst.msk [vmem:[#allocation3 + $0x58] sm:$0xff] %vm1095_vm5, %v1022_v2 }
 0x224   : > { %1802 = vrot.lane.b32.xlu0 %v1723_v62, %s2594_s9 }
 0x225   : > { %v1821_v27 = vpop.permute.xlu1 %1820 }
 0x226   : > { %1893 = vst.msk [vmem:[#allocation3 + $0xc0] sm:$0xff] %vm1868_vm9, %v1821_v27  ;;  %v1213_v30 = vpop.permute.xlu0 %1212  ;;  %v1909_v1 = vld [vmem:[#allocation3 + $0x40] sm:$0xff] }
 0x227   : > { %1832 = vrot.lane.b32.xlu1 %v1738_v14, %s2594_s9  ;;  %1299 = vst.msk [vmem:[#allocation3 + $0x50] sm:$0xff] %vm1288_vm6, %v1213_v30  ;;  %2507 = vmatprep.mubr.msk.f32.mxu0 %vm1949_vm10, %v1909_v1 }
 0x229   : > { %v1054_v39 = vpop.permute.xlu1 %1053 }
 0x22a   : > { %1123 = vst.msk [vmem:[#allocation3 + $0xd8] sm:$0xff] %vm1095_vm5, %v1054_v39  ;;  %v1791_v40 = vpop.permute.xlu0 %1790 }
 0x22b   : > { %1834 = vrot.lane.b32.xlu1 %v1739_v32, %s2594_s9  ;;  %1878 = vst.msk [vmem:[#allocation3 + $0x48] sm:$0xff] %vm1868_vm9, %v1791_v40 }
 0x22d   : > { %v1245_v41 = vpop.permute.xlu1 %1244  ;;  %v1925_v19 = vld [vmem:[#allocation3 + $0xc0] sm:$0xff] }
 0x22e   : > { %1315 = vst.msk [vmem:[#allocation3 + $0xd0] sm:$0xff] %vm1288_vm6, %v1245_v41  ;;  %2531 = vmatprep.mubr.msk.f32.mxu1 %vm1949_vm10, %v1925_v19  ;;  %v1215_v42 = vpop.permute.xlu0 %1214 }
 0x22f   : > { %1300 = vst.msk [vmem:[#allocation3 + $0x58] sm:$0xff] %vm1288_vm6, %v1215_v42 }
 0x231   : > { %v1823_v53 = vpop.permute.xlu1 %1822 }
 0x232   : > { %1894 = vst.msk [vmem:[#allocation3 + $0xc8] sm:$0xff] %vm1868_vm9, %v1823_v53  ;;  %v1407_v43 = vpop.permute.xlu0 %1406  ;;  %v1910_v13 = vld [vmem:[#allocation3 + $0x48] sm:$0xff] }
 0x233   : > { %1493 = vst.msk [vmem:[#allocation3 + $0x50] sm:$0xff] %vm1482_vm7, %v1407_v43  ;;  %2508 = vmatmul.mubr.msk.f32.gmra.mxu0 %vm1949_vm10, %v1910_v13 }
 0x235   : > { %v1247_v20 = vpop.permute.xlu1 %1246 }
 0x236   : > { %1316 = vst.msk [vmem:[#allocation3 + $0xd8] sm:$0xff] %vm1288_vm6, %v1247_v20  ;;  %v1409_v56 = vpop.permute.xlu0 %1408 }
 0x237   : > { %1494 = vst.msk [vmem:[#allocation3 + $0x58] sm:$0xff] %vm1482_vm7, %v1409_v56 }
 0x239   : > { %v1439_v44 = vpop.permute.xlu1 %1438  ;;  %v1926_v11 = vld [vmem:[#allocation3 + $0xc8] sm:$0xff] }
 0x23a   : > { %1509 = vst.msk [vmem:[#allocation3 + $0xd0] sm:$0xff] %vm1482_vm7, %v1439_v44  ;;  %2532 = vmatmul.mubr.msk.f32.gmra.mxu1 %vm1949_vm10, %v1926_v11  ;;  %v1600_v45 = vpop.permute.xlu0 %1599 }
 0x23b   : > { %1686 = vst.msk [vmem:[#allocation3 + $0x50] sm:$0xff] %vm1675_vm8, %v1600_v45 }
 0x23d   : > { %v1441_v28 = vpop.permute.xlu1 %1440 }
 0x23e   : > { %1510 = vst.msk [vmem:[#allocation3 + $0xd8] sm:$0xff] %vm1482_vm7, %v1441_v28  ;;  %v1024_v57 = vpop.permute.xlu0 %1023 }
 0x23f   : > { %1108 = vst.msk [vmem:[#allocation3 + $0x60] sm:$0xff] %vm1095_vm5, %v1024_v57 }
 0x241   : > { %v1632_v12 = vpop.permute.xlu1 %1631 }
 0x242   : > { %1702 = vst.msk [vmem:[#allocation3 + $0xd0] sm:$0xff] %vm1675_vm8, %v1632_v12  ;;  %v1602_v51 = vpop.permute.xlu0 %1601 }
 0x243   : > { %1687 = vst.msk [vmem:[#allocation3 + $0x58] sm:$0xff] %vm1675_vm8, %v1602_v51 }
 0x245   : > { %v1056_v58 = vpop.permute.xlu1 %1055 }
 0x246   : > { %1124 = vst.msk [vmem:[#allocation3 + $0xe0] sm:$0xff] %vm1095_vm5, %v1056_v58  ;;  %v1793_v6 = vpop.permute.xlu0 %1792 }
 0x247   : > { %1879 = vst.msk [vmem:[#allocation3 + $0x50] sm:$0xff] %vm1868_vm9, %v1793_v6 }
 0x249   : > { %v1634_v50 = vpop.permute.xlu1 %1633 }
 0x24a   : > { %1703 = vst.msk [vmem:[#allocation3 + $0xd8] sm:$0xff] %vm1675_vm8, %v1634_v50  ;;  %v1026_v7 = vpop.permute.xlu0 %1025 }
 0x24b   : > { %1109 = vst.msk [vmem:[#allocation3 + $0x68] sm:$0xff] %vm1095_vm5, %v1026_v7 }
 0x24d   : > { %v1825_v52 = vpop.permute.xlu1 %1824 }
 0x24e   : > { %1895 = vst.msk [vmem:[#allocation3 + $0xd0] sm:$0xff] %vm1868_vm9, %v1825_v52  ;;  %v1217_v4 = vpop.permute.xlu0 %1216  ;;  %v1911_v3 = vld [vmem:[#allocation3 + $0x50] sm:$0xff] }
 0x24f   : > { %1301 = vst.msk [vmem:[#allocation3 + $0x60] sm:$0xff] %vm1288_vm6, %v1217_v4  ;;  %2510 = vmatprep.mubr.msk.f32.mxu0 %vm1949_vm10, %v1911_v3 }
 0x251   : > { %v1058_v26 = vpop.permute.xlu1 %1057 }
 0x252   : > { %1125 = vst.msk [vmem:[#allocation3 + $0xe8] sm:$0xff] %vm1095_vm5, %v1058_v26  ;;  %v1795_v47 = vpop.permute.xlu0 %1794 }
 0x253   : > { %1880 = vst.msk [vmem:[#allocation3 + $0x58] sm:$0xff] %vm1868_vm9, %v1795_v47 }
 0x255   : > { %v1249_v5 = vpop.permute.xlu1 %1248  ;;  %v1927_v31 = vld [vmem:[#allocation3 + $0xd0] sm:$0xff] }
 0x256   : > { %1317 = vst.msk [vmem:[#allocation3 + $0xe0] sm:$0xff] %vm1288_vm6, %v1249_v5  ;;  %2534 = vmatprep.mubr.msk.f32.mxu1 %vm1949_vm10, %v1927_v31  ;;  %v1219_v10 = vpop.permute.xlu0 %1218 }
 0x257   : > { %1302 = vst.msk [vmem:[#allocation3 + $0x68] sm:$0xff] %vm1288_vm6, %v1219_v10 }
 0x259   : > { %v1827_v35 = vpop.permute.xlu1 %1826 }
 0x25a   : > { %1896 = vst.msk [vmem:[#allocation3 + $0xd8] sm:$0xff] %vm1868_vm9, %v1827_v35  ;;  %v1411_v38 = vpop.permute.xlu0 %1410  ;;  %v1912_v49 = vld [vmem:[#allocation3 + $0x58] sm:$0xff] }
 0x25b   : > { %1495 = vst.msk [vmem:[#allocation3 + $0x60] sm:$0xff] %vm1482_vm7, %v1411_v38  ;;  %2511 = vmatmul.mubr.msk.f32.gmra.mxu0 %vm1949_vm10, %v1912_v49 }
 0x25d   : > { %v1251_v37 = vpop.permute.xlu1 %1250 }
 0x25e   : > { %1318 = vst.msk [vmem:[#allocation3 + $0xe8] sm:$0xff] %vm1288_vm6, %v1251_v37  ;;  %v1413_v36 = vpop.permute.xlu0 %1412 }
 0x25f   : > { %1496 = vst.msk [vmem:[#allocation3 + $0x68] sm:$0xff] %vm1482_vm7, %v1413_v36 }
 0x261   : > { %v1443_v22 = vpop.permute.xlu1 %1442  ;;  %v1928_v17 = vld [vmem:[#allocation3 + $0xd8] sm:$0xff] }
 0x262   : > { %1511 = vst.msk [vmem:[#allocation3 + $0xe0] sm:$0xff] %vm1482_vm7, %v1443_v22  ;;  %2535 = vmatmul.mubr.msk.f32.gmra.mxu1 %vm1949_vm10, %v1928_v17  ;;  %v1604_v46 = vpop.permute.xlu0 %1603 }
 0x263   : > { %1688 = vst.msk [vmem:[#allocation3 + $0x60] sm:$0xff] %vm1675_vm8, %v1604_v46  ;;  %v2521_v29 = vpop.f32.mrf.mxu1 }
 0x264   : > { %v2198_v59 = vadd.f32 %v2521_v29, %v3608_v15 }
 0x265   : > { %v1445_v18 = vpop.permute.xlu1 %1444  ;;  %v2192_v48 = vpop.f32.mrf.mxu1 }
 0x266   : > { %1512 = vst.msk [vmem:[#allocation3 + $0xe8] sm:$0xff] %vm1482_vm7, %v1445_v18  ;;  %v2497_v16 = vpop.f32.mrf.mxu0  ;;  %v2288_v34 = vmax.f32 %v2198_v59, 0.0  ;;  %v2193_v23 = vadd.f32 %v3608_v15, %v2192_v48  ;;  %v1028_v61 = vpop.permute.xlu0 %1027 }
 0x267   : > { %v2118_v60 = vadd.f32 %v2497_v16, %v3608_v15  ;;  %1110 = vst.msk [vmem:[#allocation3 + $0x70] sm:$0xff] %vm1095_vm5, %v1028_v61 }
 0x268   : > { %v2112_v33 = vpop.f32.mrf.mxu0  ;;  %2320 = vst.msk [vmem:[%s3620_s25 + $0x88] sm:$0xff] %vm171_vm0, %v2288_v34  ;;  %v2287_v54 = vmax.f32 %v2193_v23, 0.0 }
 0x269   : > { %v2272_v63 = vmax.f32 %v2118_v60, 0.0  ;;  %v2113_v8 = vadd.f32 %v3608_v15, %v2112_v33  ;;  %v1636_v21 = vpop.permute.xlu1 %1635 }
 0x26a   : > { %1704 = vst.msk [vmem:[#allocation3 + $0xe0] sm:$0xff] %vm1675_vm8, %v1636_v21  ;;  %v1606_v9 = vpop.permute.xlu0 %1605 }
 0x26b   : > { %2304 = vst.msk [vmem:[%s3620_s25 + $0x8] sm:$0xff] %vm171_vm0, %v2272_v63  ;;  %v2271_v0 = vmax.f32 %v2113_v8, 0.0  ;;  %2319 = vst.msk [vmem:[%s3620_s25 + $0x80] sm:$0xff] %vm171_vm0, %v2287_v54 }
 0x26c   : > { %1689 = vst.msk [vmem:[#allocation3 + $0x68] sm:$0xff] %vm1675_vm8, %v1606_v9 }
 0x26d   : > { %2303 = vst.msk [vmem:[%s3620_s25] sm:$0xff] %vm171_vm0, %v2271_v0  ;;  %v1060_v55 = vpop.permute.xlu1 %1059 }
 0x26e   : > { %1126 = vst.msk [vmem:[#allocation3 + $0xf0] sm:$0xff] %vm1095_vm5, %v1060_v55  ;;  %v1797_v24 = vpop.permute.xlu0 %1796 }
 0x26f   : > { %1881 = vst.msk [vmem:[#allocation3 + $0x60] sm:$0xff] %vm1868_vm9, %v1797_v24 }
 0x271   : > { %v1638_v25 = vpop.permute.xlu1 %1637 }
 0x272   : > { %1705 = vst.msk [vmem:[#allocation3 + $0xe8] sm:$0xff] %vm1675_vm8, %v1638_v25  ;;  %v1030_v62 = vpop.permute.xlu0 %1029 }
 0x273   : > { %1111 = vst.msk [vmem:[#allocation3 + $0x78] sm:$0xff] %vm1095_vm5, %v1030_v62 }
 0x275   : > { %v1829_v2 = vpop.permute.xlu1 %1828 }
 0x276   : > { %1897 = vst.msk [vmem:[#allocation3 + $0xe0] sm:$0xff] %vm1868_vm9, %v1829_v2  ;;  %v1221_v14 = vpop.permute.xlu0 %1220  ;;  %v1913_v27 = vld [vmem:[#allocation3 + $0x60] sm:$0xff] }
 0x277   : > { %1303 = vst.msk [vmem:[#allocation3 + $0x70] sm:$0xff] %vm1288_vm6, %v1221_v14  ;;  %2513 = vmatprep.mubr.msk.f32.mxu0 %vm1949_vm10, %v1913_v27 }
 0x279   : > { %v1062_v30 = vpop.permute.xlu1 %1061 }
 0x27a   : > { %1127 = vst.msk [vmem:[#allocation3 + $0xf8] sm:$0xff] %vm1095_vm5, %v1062_v30  ;;  %v1799_v1 = vpop.permute.xlu0 %1798 }
 0x27b   : > { %1882 = vst.msk [vmem:[#allocation3 + $0x68] sm:$0xff] %vm1868_vm9, %v1799_v1 }
 0x27d   : > { %v1253_v32 = vpop.permute.xlu1 %1252  ;;  %v1929_v39 = vld [vmem:[#allocation3 + $0xe0] sm:$0xff] }
 0x27e   : > { %1319 = vst.msk [vmem:[#allocation3 + $0xf0] sm:$0xff] %vm1288_vm6, %v1253_v32  ;;  %2537 = vmatprep.mubr.msk.f32.mxu1 %vm1949_vm10, %v1929_v39  ;;  %v1223_v40 = vpop.permute.xlu0 %1222 }
 0x27f   : > { %1304 = vst.msk [vmem:[#allocation3 + $0x78] sm:$0xff] %vm1288_vm6, %v1223_v40 }
 0x281   : > { %v1831_v41 = vpop.permute.xlu1 %1830 }
 0x282   : > { %1898 = vst.msk [vmem:[#allocation3 + $0xe8] sm:$0xff] %vm1868_vm9, %v1831_v41  ;;  %v1415_v19 = vpop.permute.xlu0 %1414  ;;  %v1914_v42 = vld [vmem:[#allocation3 + $0x68] sm:$0xff] }
 0x283   : > { %1497 = vst.msk [vmem:[#allocation3 + $0x70] sm:$0xff] %vm1482_vm7, %v1415_v19  ;;  %2514 = vmatmul.mubr.msk.f32.gmra.mxu0 %vm1949_vm10, %v1914_v42 }
 0x285   : > { %v1255_v53 = vpop.permute.xlu1 %1254 }
 0x286   : > { %1320 = vst.msk [vmem:[#allocation3 + $0xf8] sm:$0xff] %vm1288_vm6, %v1255_v53  ;;  %v1417_v43 = vpop.permute.xlu0 %1416 }
 0x287   : > { %1498 = vst.msk [vmem:[#allocation3 + $0x78] sm:$0xff] %vm1482_vm7, %v1417_v43  ;;  %v2524_v13 = vpop.f32.mrf.mxu1 }
 0x288   : > { %v2208_v44 = vadd.f32 %v2524_v13, %v3608_v15 }
 0x289   : > { %v1447_v20 = vpop.permute.xlu1 %1446  ;;  %v1930_v56 = vld [vmem:[#allocation3 + $0xe8] sm:$0xff]  ;;  %v2202_v45 = vpop.f32.mrf.mxu1 }
 0x28a   : > { %1513 = vst.msk [vmem:[#allocation3 + $0xf0] sm:$0xff] %vm1482_vm7, %v1447_v20  ;;  %v2500_v11 = vpop.f32.mrf.mxu0  ;;  %2538 = vmatmul.mubr.msk.f32.gmra.mxu1 %vm1949_vm10, %v1930_v56  ;;  %v2290_v57 = vmax.f32 %v2208_v44, 0.0  ;;  %v2203_v12 = vadd.f32 %v3608_v15, %v2202_v45  ;;  %v1608_v51 = vpop.permute.xlu0 %1607 }
 0x28b   : > { %v2128_v28 = vadd.f32 %v2500_v11, %v3608_v15  ;;  %1690 = vst.msk [vmem:[#allocation3 + $0x70] sm:$0xff] %vm1675_vm8, %v1608_v51 }
 0x28c   : > { %v2122_v58 = vpop.f32.mrf.mxu0  ;;  %2322 = vst.msk [vmem:[%s3620_s25 + $0x98] sm:$0xff] %vm171_vm0, %v2290_v57  ;;  %v2289_v52 = vmax.f32 %v2203_v12, 0.0 }
 0x28d   : > { %v2274_v6 = vmax.f32 %v2128_v28, 0.0  ;;  %v2123_v50 = vadd.f32 %v3608_v15, %v2122_v58  ;;  %v1449_v7 = vpop.permute.xlu1 %1448 }
 0x28e   : > { %1514 = vst.msk [vmem:[#allocation3 + $0xf8] sm:$0xff] %vm1482_vm7, %v1449_v7  ;;  %v1610_v3 = vpop.permute.xlu0 %1609 }
 0x28f   : > { %2306 = vst.msk [vmem:[%s3620_s25 + $0x18] sm:$0xff] %vm171_vm0, %v2274_v6  ;;  %v2273_v4 = vmax.f32 %v2123_v50, 0.0  ;;  %2321 = vst.msk [vmem:[%s3620_s25 + $0x90] sm:$0xff] %vm171_vm0, %v2289_v52 }
 0x290   : > { %1691 = vst.msk [vmem:[#allocation3 + $0x78] sm:$0xff] %vm1675_vm8, %v1610_v3 }
 0x291   : > { %2305 = vst.msk [vmem:[%s3620_s25 + $0x10] sm:$0xff] %vm171_vm0, %v2273_v4  ;;  %v1640_v26 = vpop.permute.xlu1 %1639 }
 0x292   : > { %1706 = vst.msk [vmem:[#allocation3 + $0xf0] sm:$0xff] %vm1675_vm8, %v1640_v26  ;;  %v1801_v47 = vpop.permute.xlu0 %1800 }
 0x293   : > { %1883 = vst.msk [vmem:[#allocation3 + $0x70] sm:$0xff] %vm1868_vm9, %v1801_v47 }
 0x295   : > { %v1642_v5 = vpop.permute.xlu1 %1641 }
 0x296   : > { %1707 = vst.msk [vmem:[#allocation3 + $0xf8] sm:$0xff] %vm1675_vm8, %v1642_v5  ;;  %v1803_v31 = vpop.permute.xlu0 %1802 }
 0x297   : > { %1884 = vst.msk [vmem:[#allocation3 + $0x78] sm:$0xff] %vm1868_vm9, %v1803_v31 }
 0x299   : > { %v1833_v10 = vpop.permute.xlu1 %1832 }
 0x29a   : > { %1899 = vst.msk [vmem:[#allocation3 + $0xf0] sm:$0xff] %vm1868_vm9, %v1833_v10  ;;  %v1915_v35 = vld [vmem:[#allocation3 + $0x70] sm:$0xff] }
 0x29b   : > { %2516 = vmatprep.mubr.msk.f32.mxu0 %vm1949_vm10, %v1915_v35 }
 0x29d   : > { %v1835_v38 = vpop.permute.xlu1 %1834 }
 0x29e   : > { %1900 = vst.msk [vmem:[#allocation3 + $0xf8] sm:$0xff] %vm1868_vm9, %v1835_v38  ;;  %v1916_v49 = vld [vmem:[#allocation3 + $0x78] sm:$0xff] }
 0x29f   : > { %2517 = vmatmul.mubr.msk.f32.gmra.mxu0 %vm1949_vm10, %v1916_v49 }
 0x2a1   : > { %v1931_v37 = vld [vmem:[#allocation3 + $0xf0] sm:$0xff] }
 0x2a2   : > { %2540 = vmatprep.mubr.msk.f32.mxu1 %vm1949_vm10, %v1931_v37 }
 0x2a5   : > { %v1932_v36 = vld [vmem:[#allocation3 + $0xf8] sm:$0xff] }
 0x2a6   : > { %2541 = vmatmul.mubr.msk.f32.gmra.mxu1 %vm1949_vm10, %v1932_v36 }
 0x2ab   : > { %v2527_v22 = vpop.f32.mrf.mxu1 }
 0x2ac   : > { %v2218_v17 = vadd.f32 %v2527_v22, %v3608_v15 }
 0x2ad   : > { %v2212_v29 = vpop.f32.mrf.mxu1 }
 0x2ae   : > { %v2503_v46 = vpop.f32.mrf.mxu0  ;;  %v2292_v59 = vmax.f32 %v2218_v17, 0.0  ;;  %v2213_v16 = vadd.f32 %v3608_v15, %v2212_v29 }
 0x2af   : > { %v2138_v18 = vadd.f32 %v2503_v46, %v3608_v15 }
 0x2b0   : > { %v2132_v48 = vpop.f32.mrf.mxu0  ;;  %2324 = vst.msk [vmem:[%s3620_s25 + $0xa8] sm:$0xff] %vm171_vm0, %v2292_v59  ;;  %v2291_v23 = vmax.f32 %v2213_v16, 0.0 }
 0x2b1   : > { %v2276_v60 = vmax.f32 %v2138_v18, 0.0  ;;  %v2133_v34 = vadd.f32 %v3608_v15, %v2132_v48 }
 0x2b2   : > { %2323 = vst.msk [vmem:[%s3620_s25 + $0xa0] sm:$0xff] %vm171_vm0, %v2291_v23 }
 0x2b3   : > { %2308 = vst.msk [vmem:[%s3620_s25 + $0x28] sm:$0xff] %vm171_vm0, %v2276_v60  ;;  %v2275_v61 = vmax.f32 %v2133_v34, 0.0 }
 0x2b5   : > { %2307 = vst.msk [vmem:[%s3620_s25 + $0x20] sm:$0xff] %vm171_vm0, %v2275_v61 }
 0x2cf   : > { %v2530_v33 = vpop.f32.mrf.mxu1 }
 0x2d0   : > { %v2228_v63 = vadd.f32 %v2530_v33, %v3608_v15 }
 0x2d1   : > { %v2222_v21 = vpop.f32.mrf.mxu1 }
 0x2d2   : > { %v2506_v8 = vpop.f32.mrf.mxu0  ;;  %v2294_v0 = vmax.f32 %v2228_v63, 0.0  ;;  %v2223_v9 = vadd.f32 %v3608_v15, %v2222_v21 }
 0x2d3   : > { %v2148_v54 = vadd.f32 %v2506_v8, %v3608_v15 }
 0x2d4   : > { %v2142_v55 = vpop.f32.mrf.mxu0  ;;  %2326 = vst.msk [vmem:[%s3620_s25 + $0xb8] sm:$0xff] %vm171_vm0, %v2294_v0  ;;  %v2293_v62 = vmax.f32 %v2223_v9, 0.0 }
 0x2d5   : > { %v2278_v24 = vmax.f32 %v2148_v54, 0.0  ;;  %v2143_v25 = vadd.f32 %v3608_v15, %v2142_v55 }
 0x2d6   : > { %2325 = vst.msk [vmem:[%s3620_s25 + $0xb0] sm:$0xff] %vm171_vm0, %v2293_v62 }
 0x2d7   : > { %2310 = vst.msk [vmem:[%s3620_s25 + $0x38] sm:$0xff] %vm171_vm0, %v2278_v24  ;;  %v2277_v2 = vmax.f32 %v2143_v25, 0.0 }
 0x2d9   : > { %2309 = vst.msk [vmem:[%s3620_s25 + $0x30] sm:$0xff] %vm171_vm0, %v2277_v2 }
 0x2f3   : > { %v2509_v14 = vpop.f32.mrf.mxu0 }
 0x2f4   : > { %v2158_v27 = vadd.f32 %v2509_v14, %v3608_v15 }
 0x2f5   : > { %v2152_v30 = vpop.f32.mrf.mxu0 }
 0x2f6   : > { %v2280_v1 = vmax.f32 %v2158_v27, 0.0  ;;  %v2153_v32 = vadd.f32 %v3608_v15, %v2152_v30 }
 0x2f8   : > { %2312 = vst.msk [vmem:[%s3620_s25 + $0x48] sm:$0xff] %vm171_vm0, %v2280_v1  ;;  %v2279_v39 = vmax.f32 %v2153_v32, 0.0 }
 0x2fa   : > { %v2533_v40 = vpop.f32.mrf.mxu1  ;;  %2311 = vst.msk [vmem:[%s3620_s25 + $0x40] sm:$0xff] %vm171_vm0, %v2279_v39 }
 0x2fb   : > { %v2238_v41 = vadd.f32 %v2533_v40, %v3608_v15 }
 0x2fc   : > { %v2232_v19 = vpop.f32.mrf.mxu1 }
 0x2fd   : > { %v2296_v42 = vmax.f32 %v2238_v41, 0.0  ;;  %v2233_v53 = vadd.f32 %v3608_v15, %v2232_v19 }
 0x2ff   : > { %2328 = vst.msk [vmem:[%s3620_s25 + $0xc8] sm:$0xff] %vm171_vm0, %v2296_v42  ;;  %v2295_v43 = vmax.f32 %v2233_v53, 0.0 }
 0x301   : > { %2327 = vst.msk [vmem:[%s3620_s25 + $0xc0] sm:$0xff] %vm171_vm0, %v2295_v43 }
 0x31b   : > { %v2512_v13 = vpop.f32.mrf.mxu0 }
 0x31c   : > { %v2168_v20 = vadd.f32 %v2512_v13, %v3608_v15 }
 0x31d   : > { %v2162_v56 = vpop.f32.mrf.mxu0 }
 0x31e   : > { %v2282_v44 = vmax.f32 %v2168_v20, 0.0  ;;  %v2163_v11 = vadd.f32 %v3608_v15, %v2162_v56 }
 0x320   : > { %2314 = vst.msk [vmem:[%s3620_s25 + $0x58] sm:$0xff] %vm171_vm0, %v2282_v44  ;;  %v2281_v45 = vmax.f32 %v2163_v11, 0.0 }
 0x322   : > { %v2536_v28 = vpop.f32.mrf.mxu1  ;;  %2313 = vst.msk [vmem:[%s3620_s25 + $0x50] sm:$0xff] %vm171_vm0, %v2281_v45 }
 0x323   : > { %v2248_v57 = vadd.f32 %v2536_v28, %v3608_v15 }
 0x324   : > { %v2242_v12 = vpop.f32.mrf.mxu1 }
 0x325   : > { %v2298_v51 = vmax.f32 %v2248_v57, 0.0  ;;  %v2243_v58 = vadd.f32 %v3608_v15, %v2242_v12 }
 0x327   : > { %2330 = vst.msk [vmem:[%s3620_s25 + $0xd8] sm:$0xff] %vm171_vm0, %v2298_v51  ;;  %v2297_v6 = vmax.f32 %v2243_v58, 0.0 }
 0x329   : > { %2329 = vst.msk [vmem:[%s3620_s25 + $0xd0] sm:$0xff] %vm171_vm0, %v2297_v6 }
 0x343   : > { %v2515_v50 = vpop.f32.mrf.mxu0 }
 0x344   : > { %v2178_v7 = vadd.f32 %v2515_v50, %v3608_v15 }
 0x345   : > { %v2172_v52 = vpop.f32.mrf.mxu0 }
 0x346   : > { %v2284_v4 = vmax.f32 %v2178_v7, 0.0  ;;  %v2173_v3 = vadd.f32 %v3608_v15, %v2172_v52 }
 0x348   : > { %2316 = vst.msk [vmem:[%s3620_s25 + $0x68] sm:$0xff] %vm171_vm0, %v2284_v4  ;;  %v2283_v26 = vmax.f32 %v2173_v3, 0.0 }
 0x34a   : > { %v2539_v47 = vpop.f32.mrf.mxu1  ;;  %2315 = vst.msk [vmem:[%s3620_s25 + $0x60] sm:$0xff] %vm171_vm0, %v2283_v26 }
 0x34b   : > { %v2258_v5 = vadd.f32 %v2539_v47, %v3608_v15 }
 0x34c   : > { %v2252_v31 = vpop.f32.mrf.mxu1 }
 0x34d   : > { %v2300_v10 = vmax.f32 %v2258_v5, 0.0  ;;  %v2253_v35 = vadd.f32 %v3608_v15, %v2252_v31 }
 0x34f   : > { %2332 = vst.msk [vmem:[%s3620_s25 + $0xe8] sm:$0xff] %vm171_vm0, %v2300_v10  ;;  %v2299_v38 = vmax.f32 %v2253_v35, 0.0 }
 0x351   : > { %2331 = vst.msk [vmem:[%s3620_s25 + $0xe0] sm:$0xff] %vm171_vm0, %v2299_v38 }
 0x35f   : > { %v2518_v49 = vpop.f32.mrf.mxu0 }
 0x360   : > { %v2188_v37 = vadd.f32 %v2518_v49, %v3608_v15 }
 0x361   : > { %v2182_v36 = vpop.f32.mrf.mxu0 }
 0x362   : > { %v2286_v22 = vmax.f32 %v2188_v37, 0.0  ;;  %v2183_v17 = vadd.f32 %v3608_v15, %v2182_v36 }
 0x364   : > { %2318 = vst.msk [vmem:[%s3620_s25 + $0x78] sm:$0xff] %vm171_vm0, %v2286_v22  ;;  %v2285_v46 = vmax.f32 %v2183_v17, 0.0 }
 0x366   : > { %v2542_v29 = vpop.f32.mrf.mxu1  ;;  %2317 = vst.msk [vmem:[%s3620_s25 + $0x70] sm:$0xff] %vm171_vm0, %v2285_v46 }
 0x367   : > { %v2268_v18 = vadd.f32 %v2542_v29, %v3608_v15 }
 0x368   : > { %v2262_v59 = vpop.f32.mrf.mxu1 }
 0x369   : > { %v2302_v16 = vmax.f32 %v2268_v18, 0.0  ;;  %v2263_v48 = vadd.f32 %v3608_v15, %v2262_v59 }
 0x36b   : > { %2334 = vst.msk [vmem:[%s3620_s25 + $0xf8] sm:$0xff] %vm171_vm0, %v2302_v16  ;;  %v2301_v60 = vmax.f32 %v2263_v48, 0.0 }
 0x36d   : > { %2333 = vst.msk [vmem:[%s3620_s25 + $0xf0] sm:$0xff] %vm171_vm0, %v2301_v60 }
 0x36e PF: > { %s13_s12 = sadd.s32 1, %s2584_s12  }
 0x36f   : > { %p10_p4 = scmp.ge.s32.totalorder %s13_s12, 4  }
 0x371   :  { %12 = sbr.rel (!%p10_p4) target bundleno = 1 (0x1), region = 64 }

</bundles_post_ra>
